<compile_context>
chip_gen: v7x
topology: tpu7x:2x2x1
jax: 0.10.0
libtpu: 0.0.40
codegen_flags: <defaults>
</compile_context>

<pallas_src>
import jax
import jax.numpy as jnp
from jax import lax
from jax.experimental import pallas as pl
from jax.experimental.pallas import tpu as pltpu


def _self_attn_kernel(x_ref, wqkv_ref, bqkv_ref, out_ref, attn_ref):
    Bt, N, D = x_ref.shape
    x = x_ref[...].astype(jnp.float32)                              # (Bt, N, D)

    # Fused QKV projection: one MXU matmul over all Bt*N rows.
    # (1/sqrt(D) is already folded into the Q columns of wqkv / bqkv.)
    qkv = lax.dot_general(
        x, wqkv_ref[...], (((2,), (0,)), ((), ())),
        preferred_element_type=jnp.float32) + bqkv_ref[...]         # (Bt, N, 3D)
    q = qkv[..., :D]
    k = qkv[..., D:2 * D]
    v = qkv[..., 2 * D:]

    # energy[b, i, j] = sum_n Q[b, n, i] * K[b, n, j]
    # (transpose expressed through contraction dims — no .T / vxpose)
    energy = jnp.einsum('bni,bnj->bij', q, k,
                        preferred_element_type=jnp.float32)         # (Bt, D, D)

    # Numerically-stable softmax over the last dim (f32 elementwise).
    e_max = jnp.max(energy, axis=-1, keepdims=True)
    p = jnp.exp(energy - e_max)
    attn = p * pl.reciprocal(jnp.sum(p, axis=-1, keepdims=True), approx=True)

    # out[b, n, i] = sum_j V[b, n, j] * attn[b, i, j]
    out = jnp.einsum('bnj,bij->bni', v, attn,
                     preferred_element_type=jnp.float32)            # (Bt, N, D)

    # Lane-dense stores: flatten trailing dims so the output last dim is a
    # multiple of 128 lanes (N*D = 256, D*D = 1024) instead of masked 32-lane
    # stores; the wrapper reshapes back to (B, N, D) / (B, D, D).
    out_ref[...] = out.reshape(Bt, N * D).astype(out_ref.dtype)
    attn_ref[...] = attn.reshape(Bt, D * D).astype(attn_ref.dtype)


def prepare_fused_params(wq_t, bq, wk_t, bk, wv_t, bv):
    """One-time parameter prep: fuse QKV and fold in the 1/sqrt(D) normalizer.

    w*_t are (D, D) already-transposed weights (W.T), b* are (1, D)."""
    D = wq_t.shape[0]
    norm = 1.0 / float(D) ** 0.5
    wqkv_t = jnp.concatenate([wq_t * norm, wk_t, wv_t], axis=1)     # (D, 3D)
    bqkv = jnp.concatenate([bq * norm, bk, bv], axis=1)             # (1, 3D)
    return wqkv_t, bqkv


def self_attn_forward(x, wqkv_t, bqkv, *, batch_block=8):
    """x: (B, N, D). wqkv_t: (D, 3D) fused/scaled. bqkv: (1, 3D) fused/scaled."""
    B, N, D = x.shape
    Bt = min(batch_block, B)
    assert B % Bt == 0, "batch must be divisible by the batch block"

    grid_spec = pltpu.PrefetchScalarGridSpec(
        num_scalar_prefetch=0,
        grid=(B // Bt,),
        in_specs=[
            pl.BlockSpec((Bt, N, D), lambda b: (b, 0, 0)),          # x
            pl.BlockSpec((D, 3 * D), lambda b: (0, 0)),             # fused Wqkv^T
            pl.BlockSpec((1, 3 * D), lambda b: (0, 0)),             # fused bias
        ],
        out_specs=[
            pl.BlockSpec((Bt, N * D), lambda b: (b, 0)),            # out (flat)
            pl.BlockSpec((Bt, D * D), lambda b: (b, 0)),            # attention (flat)
        ],
    )

    out_shapes = (
        jax.ShapeDtypeStruct((B, N * D), x.dtype),
        jax.ShapeDtypeStruct((B, D * D), x.dtype),
    )

    out_flat, attn_flat = pl.pallas_call(
        _self_attn_kernel,
        out_shape=out_shapes,
        grid_spec=grid_spec,
        compiler_params=pltpu.CompilerParams(
            dimension_semantics=("parallel",)),
    )(x, wqkv_t, bqkv)

    return out_flat.reshape(B, N, D), attn_flat.reshape(B, D, D)


def self_attn_reference(x, wq_t, bq, wk_t, bk, wv_t, bv):
    """Pure-JAX reference with the ORIGINAL (un-fused, un-scaled) params."""
    D = x.shape[-1]
    q = x @ wq_t + bq                                               # (B, N, D)
    k = x @ wk_t + bk
    v = x @ wv_t + bv
    energy = jnp.einsum('bni,bnj->bij', q, k) / jnp.sqrt(jnp.float32(D))
    attn = jax.nn.softmax(energy, axis=-1)
    out = jnp.einsum('bnj,bij->bni', v, attn)
    return out, attn


if __name__ == "__main__":
    # batch, n_children, MEM_DIM (in_dim). B=16 with Bt=8 -> grid=(2,).
    B, N, D = 16, 8, 32

    key = jax.random.PRNGKey(0)
    kx, kq, kbq, kk, kbk, kv, kbv = jax.random.split(key, 7)

    # PyTorch-style uniform(-1/sqrt(D), 1/sqrt(D)) init.
    bound = 1.0 / (D ** 0.5)
    init = lambda k, shape: jax.random.uniform(
        k, shape, jnp.float32, minval=-bound, maxval=bound)

    x = jax.random.normal(kx, (B, N, D), jnp.float32)

    # nn.Linear stores W of shape (out, in); we pass W.T so the kernel does x @ W.T.
    wq_t = init(kq, (D, D)).T
    wk_t = init(kk, (D, D)).T
    wv_t = init(kv, (D, D)).T
    bq = init(kbq, (1, D))
    bk = init(kbk, (1, D))
    bv = init(kbv, (1, D))

    wqkv_t, bqkv = prepare_fused_params(wq_t, bq, wk_t, bk, wv_t, bv)

    out, attn = self_attn_forward(x, wqkv_t, bqkv, batch_block=8)
    jax.block_until_ready((out, attn))

    # Sanity check against the pure-JAX reference (tolerance accounts for the
    # EUP approximate reciprocal in the softmax denominator).
    out_ref, attn_ref = self_attn_reference(x, wq_t, bq, wk_t, bk, wv_t, bv)
    assert out.shape == (B, N, D) and attn.shape == (B, D, D)
    assert jnp.allclose(out, out_ref, atol=2e-3, rtol=2e-3)
    assert jnp.allclose(attn, attn_ref, atol=2e-3, rtol=2e-3)

    print("KERNEL_OK")
</pallas_src>

<mosaic_0001>
module attributes {stable_mosaic.version = 11 : i64} {
  func.func @_self_attn_kernel(%arg0: i32, %arg1: memref<8x8x32xf32, #tpu.memory_space<vmem>>, %arg2: memref<32x96xf32, #tpu.memory_space<vmem>>, %arg3: memref<1x96xf32, #tpu.memory_space<vmem>>, %arg4: memref<8x256xf32, #tpu.memory_space<vmem>>, %arg5: memref<8x1024xf32, #tpu.memory_space<vmem>>) attributes {dimension_semantics = [#tpu.dimension_semantics<parallel>], iteration_bounds = array<i64: 2>, scalar_prefetch = 0 : i64, scratch_operands = 0 : i64, tpu.core_type = #tpu.core_type<tc>, window_params = [{transform_indices = @transform_0, window_bounds = array<i64: 8, 8, 32>}, {pipeline_mode = #tpu.pipeline_mode<synchronous>, transform_indices = @transform_1, window_bounds = array<i64: 32, 96>}, {pipeline_mode = #tpu.pipeline_mode<synchronous>, transform_indices = @transform_2, window_bounds = array<i64: 1, 96>}, {transform_indices = @transform_3, window_bounds = array<i64: 8, 256>}, {transform_indices = @transform_4, window_bounds = array<i64: 8, 1024>}]} {
    %c0 = arith.constant 0 : index
    %c0_0 = arith.constant 0 : index
    %c0_1 = arith.constant 0 : index
    %0 = vector.load %arg1[%c0, %c0_0, %c0_1] : memref<8x8x32xf32, #tpu.memory_space<vmem>>, vector<8x8x32xf32>
    %c0_2 = arith.constant 0 : index
    %c0_3 = arith.constant 0 : index
    %1 = vector.load %arg2[%c0_2, %c0_3] : memref<32x96xf32, #tpu.memory_space<vmem>>, vector<32x96xf32>
    %cst = arith.constant dense<0.000000e+00> : vector<8x8x96xf32>
    %2 = tpu.matmul %0, %1, %cst {dimension_numbers = #tpu.dot_dimension_numbers<[2], [0], [0, 1], [1], [0, 0, 0, 1, 1, 1], [], []>} : vector<8x8x32xf32>, vector<32x96xf32>, vector<8x8x96xf32> -> vector<8x8x96xf32>
    %c0_4 = arith.constant 0 : index
    %c0_5 = arith.constant 0 : index
    %3 = vector.load %arg3[%c0_4, %c0_5] : memref<1x96xf32, #tpu.memory_space<vmem>>, vector<1x96xf32>
    %4 = vector.shape_cast %3 : vector<1x96xf32> to vector<1x1x96xf32>
    %5 = vector.broadcast %4 : vector<1x1x96xf32> to vector<8x8x96xf32>
    %6 = arith.addf %2, %5 : vector<8x8x96xf32>
    %7 = vector.extract_strided_slice %6 {offsets = [0, 0, 0], sizes = [8, 8, 32], strides = [1, 1, 1]} : vector<8x8x96xf32> to vector<8x8x32xf32>
    %8 = vector.extract_strided_slice %6 {offsets = [0, 0, 32], sizes = [8, 8, 32], strides = [1, 1, 1]} : vector<8x8x96xf32> to vector<8x8x32xf32>
    %9 = vector.extract_strided_slice %6 {offsets = [0, 0, 64], sizes = [8, 8, 32], strides = [1, 1, 1]} : vector<8x8x96xf32> to vector<8x8x32xf32>
    "tpu.trace_start"() <{level = 10 : i32, message = "bni,bnj->bij"}> : () -> ()
    %cst_6 = arith.constant dense<0.000000e+00> : vector<8x32x32xf32>
    %10 = tpu.matmul %7, %8, %cst_6 {dimension_numbers = #tpu.dot_dimension_numbers<[1], [1], [2], [2], [0, 0, 0, 2, 1, 2], [0], [0]>} : vector<8x8x32xf32>, vector<8x8x32xf32>, vector<8x32x32xf32> -> vector<8x32x32xf32>
    "tpu.trace_stop"() : () -> ()
    %cst_7 = arith.constant dense<0xFF800000> : vector<8x32xf32>
    %11 = vector.multi_reduction <maximumf>, %10, %cst_7 [2] : vector<8x32x32xf32> to vector<8x32xf32>
    %12 = vector.shape_cast %11 : vector<8x32xf32> to vector<8x32x1xf32>
    %13 = vector.broadcast %12 : vector<8x32x1xf32> to vector<8x32x32xf32>
    %14 = arith.subf %10, %13 : vector<8x32x32xf32>
    %15 = math.exp %14 : vector<8x32x32xf32>
    %cst_8 = arith.constant dense<0.000000e+00> : vector<8x32xf32>
    %16 = vector.multi_reduction <add>, %15, %cst_8 [2] : vector<8x32x32xf32> to vector<8x32xf32>
    %17 = vector.shape_cast %16 : vector<8x32xf32> to vector<8x32x1xf32>
    %18 = tpu.reciprocal %17 {approx = true} : vector<8x32x1xf32> -> vector<8x32x1xf32>
    %19 = vector.broadcast %18 : vector<8x32x1xf32> to vector<8x32x32xf32>
    %20 = arith.mulf %15, %19 : vector<8x32x32xf32>
    "tpu.trace_start"() <{level = 10 : i32, message = "bnj,bij->bni"}> : () -> ()
    %cst_9 = arith.constant dense<0.000000e+00> : vector<8x8x32xf32>
    %21 = tpu.matmul %9, %20, %cst_9 {dimension_numbers = #tpu.dot_dimension_numbers<[2], [2], [1], [1], [0, 0, 0, 1, 1, 1], [0], [0]>} : vector<8x8x32xf32>, vector<8x32x32xf32>, vector<8x8x32xf32> -> vector<8x8x32xf32>
    "tpu.trace_stop"() : () -> ()
    %22 = vector.shape_cast %21 : vector<8x8x32xf32> to vector<8x256xf32>
    %c0_10 = arith.constant 0 : index
    %c0_11 = arith.constant 0 : index
    %23 = vector.load %arg4[%c0_10, %c0_11] : memref<8x256xf32, #tpu.memory_space<vmem>>, vector<8x256xf32>
    tpu.vector_store %arg4[%c0_10, %c0_11], %22 {strides = array<i32>} : memref<8x256xf32, #tpu.memory_space<vmem>>, vector<8x256xf32>,
    %24 = vector.shape_cast %20 : vector<8x32x32xf32> to vector<8x1024xf32>
    %c0_12 = arith.constant 0 : index
    %c0_13 = arith.constant 0 : index
    %25 = vector.load %arg5[%c0_12, %c0_13] : memref<8x1024xf32, #tpu.memory_space<vmem>>, vector<8x1024xf32>
    tpu.vector_store %arg5[%c0_12, %c0_13], %24 {strides = array<i32>} : memref<8x1024xf32, #tpu.memory_space<vmem>>, vector<8x1024xf32>,
    return
  }
  func.func @transform_0(%arg0: i32) -> (i32, i32, i32) {
    %c0_i32 = arith.constant 0 : i32
    %c0_i32_0 = arith.constant 0 : i32
    %c0_i32_1 = arith.constant 0 : i32
    return %arg0, %c0_i32, %c0_i32_0 : i32, i32, i32
  }
  func.func @transform_1(%arg0: i32) -> (i32, i32) {
    %c0_i32 = arith.constant 0 : i32
    %c0_i32_0 = arith.constant 0 : i32
    %c0_i32_1 = arith.constant 0 : i32
    return %c0_i32, %c0_i32_0 : i32, i32
  }
  func.func @transform_2(%arg0: i32) -> (i32, i32) {
    %c0_i32 = arith.constant 0 : i32
    %c0_i32_0 = arith.constant 0 : i32
    %c0_i32_1 = arith.constant 0 : i32
    return %c0_i32, %c0_i32_0 : i32, i32
  }
  func.func @transform_3(%arg0: i32) -> (i32, i32) {
    %c0_i32 = arith.constant 0 : i32
    %c0_i32_0 = arith.constant 0 : i32
    return %arg0, %c0_i32 : i32, i32
  }
  func.func @transform_4(%arg0: i32) -> (i32, i32) {
    %c0_i32 = arith.constant 0 : i32
    %c0_i32_0 = arith.constant 0 : i32
    return %arg0, %c0_i32 : i32, i32
  }
}

</mosaic_0001>

<bundles_post_ra>
// kernel: tpu_custom_call.1
= control target key start
LH: loop header
LB: loop body
LE: loop exit
PB: predicated region body
PF: predicated region fallthrough
CT: control target
= control target key end

     0   :  { %10 = vsyncpa [#allocation3], 0  ;;  %s5581_s0 = inlined_call_operand.hbm [shape: f32[16,8,32], index: 0, kind: input, shape index: {}]   ;;  %s5582_s1 = inlined_call_operand.hbm [shape: f32[32,96], index: 1, kind: input, shape index: {}]   ;;  %s5583_s2 = inlined_call_operand.vmem [shape: f32[1,96], index: 2, kind: input, shape index: {}]   ;;  %s5584_s3 = inlined_call_operand.hbm [shape: f32[16,256], index: 3, kind: output, shape index: {0}]   ;;  %s5585_s4 = inlined_call_operand.hbm [shape: f32[16,1024], index: 4, kind: output, shape index: {1}]  }
   0x1   :  { %12 = vsyncpa [#allocation3 + $0x1], 0 }
   0x2   :  { %13 = vsyncpa [#allocation6], 0 }
   0x3   :  { %14 = vsyncpa [#allocation4], 0 }
   0x4   :  { %16 = vsyncpa [#allocation4 + $0x1], 0 }
   0x5   :  { %17 = vsyncpa [#allocation9], 0 }
   0x6   :  { %19 = vsyncpa [#allocation9 + $0x1], 0  ;;  %s4328_s15 = smov 0   ;;  %s4330_s16 = smov 0  }
   0x7   :  { %s4332_s17 = smov 0   ;;  %s4334_s18 = smov 0  }
   0x8 LB: > { %s4349_s19 = sadd.s32 4294967295, %s4287_s18   ;;  %s3485_s20 = sadd.s32 4294967294, %s4287_s18   ;;  %s4287_s18 = sphi %s4334_s18, %s5615_s18   ;;  %s4283_s17 = sphi %s4332_s17, %s5614_s17   ;;  %s4279_s16 = sphi %s4330_s16, %s5613_s16   ;;  %s4275_s15 = sphi %s4328_s15, %s5612_s15  }
   0x9   : > { %p45_p0 = scmp.ne.s32.totalorder %s4279_s16, %s4275_s15  ;;  %p5586_p1 = scmp.eq.s32.totalorder %s4349_s19, 0 }
   0xa   : > { %p117_p3 = scmp.eq.s32.totalorder %s3485_s20, 1  ;;  %p3486_p5 = scmp.ge.s32.totalorder %s4287_s18, 1 }
   0xb   : > { %p4358_p4 = por %p5586_p1, %p45_p0  ;;  %p150_p7 = scmp.lt.s32.totalorder %s4287_s18, 3 }
   0xc   : > { %p4363_p6 = por %p117_p3, %p45_p0  ;;  %s4289_s24 = smov [#allocation5]  }
   0xd   : > { %s5589_s21 = scalar_select %p4358_p4, 1, 0 }
   0xe   : > { %s5590_s22 = scalar_select %p4363_p6, 1, 0 }
   0xf   : > { %p4368_p8 = pnand %p3486_p5, %p150_p7  ;;  %s162_s25 = sshll.u32 %s4289_s24, 4  ;;  %s4372_s25 = int_to_ptr.vmem [resolvable:$true] %s162_s25 }
  0x10   : > { %s4384_s27 = sadd.s32 1, %s4287_s18   ;;  %s32_s28 = sadd.s32 1, %s4283_s17 }
  0x11   : > { %s5591_s23 = scalar_select %p4368_p8, 1, 0 }
  0x12   : > { %p3937_p9 = pneg %p4368_p8  ;;  %s29_s29 = ssub.s32 %s4287_s18, %s4384_s27 }
  0x13   : > { %s4127_s6 = scalar_lea.hbm %s5582_s1, 512 }
  0x14   : > { %p4379_p11 = pnand %p3937_p9, %p5586_p1  ;;  %p4128_p12 = scmp.ne.s32.totalorder %s5582_s1, %s4127_s6 }
  0x15   : > { %p4134_p5 = scmp.lt.u32.totalorder %s4127_s6, %s5582_s1 }
  0x16   : > { %p4129_p13 = pneg %p4379_p11 }
  0x18   : > { %p4130_p0 = pnand %p4129_p13, %p4128_p12 }
  0x1a   : > { %p4131_p3 = pneg %p4130_p0 }
  0x1c   : > { %p4136_p7 = pnand %p4134_p5, %p4131_p3 }
  0x1e   : > { %4139 = shalt.err (!%p4136_p7)
}
  0x1f   : > { %s4140_s11 = scalar_lea.vmem %s4372_s25, 512  ;;  %p4148_p2 = scmp.lt.s32.totalorder %s4372_s25, %s4372_s25 }
  0x20   : > { %p4141_p9 = scmp.ne.s32.totalorder %s4372_s25, %s4140_s11  ;;  %p4149_p6 = scmp.lt.s32.totalorder %s4140_s11, %s4140_s11 }
  0x22   : > { %p4143_p10 = pnand %p4141_p9, %p4129_p13  ;;  %p4150_p4 = por %p4149_p6, %p4148_p2 }
  0x24   : > { %p4144_p1 = pneg %p4143_p10 }
  0x26   : > { %p4151_p8 = pnand %p4150_p4, %p4144_p1 }
  0x28   : > { %4154 = shalt.err (!%p4151_p8)
}
  0x29   : > { %s4290_s12 = smov 128   ;;  %s4291_s13 = smov 8  }
  0x2a   : > { %3940 = dma.hbm_to_vmem [thread:$0]  (!%p4379_p11), %s5582_s1, 512, %s4372_s25, [#allocation6], %s4290_s12, %s4290_s12, %s4291_s13  }
  0x2b   : > { %p30_p1 = scmp.eq.s32.totalorder %s29_s29, 0  ;;  %p39_p2 = scmp.ne.s32.totalorder %s4283_s17, %s4279_s16 }
  0x2c   : > { %p40_p4 = scmp.eq.s32.totalorder %s4287_s18, 0  ;;  %p3953_p6 = scmp.lt.s32.totalorder %s4287_s18, 2 }
  0x2d   : > { %s4418_s24 = scalar_select %p30_p1, %s4283_s17, %s32_s28  }
  0x2e   : > { %p41_p8 = por %p40_p4, %p39_p2  ;;  %p5593_p10 = scmp.eq.s32.totalorder %s4349_s19, 1 }
  0x2f   : > { %s179_s26 = sand.u32 1, %s4283_s17   ;;  %s3586_s5 = sshll.u32 %s4287_s18, 10 }
  0x30   : > { %p4422_p12 = por %p5593_p10, %p39_p2  ;;  %s3489_s6 = sshll.u32 %s179_s26, 6 }
  0x31   : > { %s4431_s9 = scalar_lea.hbm %s5581_s0, %s3586_s5  ;;  %s183_s25 = scalar_lea.vmem [#allocation2], %s3489_s6 }
  0x32   : > { %s190_s28 = sshll.u32 %s183_s25, 4  ;;  %p4433_p11 = pnand %p3953_p6, %p41_p8  ;;  %s4437_s28 = int_to_ptr.vmem [resolvable:$true] %s190_s28 }
  0x33   : > { %s4439_s10 = scalar_lea.sflag [#allocation3], %s179_s26  ;;  %s4155_s11 = scalar_lea.hbm %s4431_s9, 1024 }
  0x34   : > { %p4156_p13 = scmp.ne.s32.totalorder %s4431_s9, %s4155_s11  ;;  %p4157_p0 = pneg %p4433_p11 }
  0x35   : > { %s4160_s5 = scalar_lea.hbm %s5581_s0, 2048  ;;  %p4161_p7 = scmp.lt.u32.totalorder %s4431_s9, %s5581_s0 }
  0x36   : > { %p4158_p3 = pnand %p4157_p0, %p4156_p13  ;;  %p4162_p9 = scmp.lt.u32.totalorder %s4160_s5, %s4155_s11 }
  0x37   : > { %p4164_p2 = scmp.lt.u32.totalorder %s4155_s11, %s4431_s9 }
  0x38   : > { %p4159_p5 = pneg %p4158_p3  ;;  %p4163_p1 = por %p4162_p9, %p4161_p7 }
  0x3a   : > { %p4165_p4 = por %p4164_p2, %p4163_p1 }
  0x3c   : > { %p4166_p6 = pnand %p4165_p4, %p4159_p5 }
  0x3e   : > { %4169 = shalt.err (!%p4166_p6)
}
  0x3f   : > { %s4170_s26 = scalar_lea.vmem %s4437_s28, 1024  ;;  %s4292_s8 = smov [#allocation2]  }
  0x40   : > { %p4171_p8 = scmp.ne.s32.totalorder %s4437_s28, %s4170_s26  ;;  %s4175_s25 = sshll.u32 %s4292_s8, 4  ;;  %s4176_s25 = int_to_ptr.vmem [resolvable:$false] %s4175_s25 }
  0x41   : > { %s4177_s14 = scalar_lea.vmem %s4176_s25, 2048  ;;  %p4178_p3 = scmp.lt.s32.totalorder %s4437_s28, %s4176_s25 }
  0x42   : > { %p4173_p10 = pnand %p4171_p8, %p4157_p0  ;;  %p4179_p7 = scmp.lt.s32.totalorder %s4177_s14, %s4170_s26 }
  0x44   : > { %p4174_p13 = pneg %p4173_p10  ;;  %p4180_p9 = por %p4179_p7, %p4178_p3 }
  0x46   : > { %p4181_p1 = pnand %p4180_p9, %p4174_p13 }
  0x48   : > { %4184 = shalt.err (!%p4181_p1)
}
  0x49   : > { %3944 = dma.hbm_to_vmem [thread:$0]  (!%p4433_p11), %s4431_s9, 1024, %s4437_s28, %s4439_s10, %s4290_s12, %s4290_s12, %s4291_s13  }
  0x4a   : > { %p5596_p0 = scmp.ne.s32.totalorder %s5591_s23, 0 }
  0x4b   : > { %s4473_s11 = sand.u32 (!%p5596_p0), 1, %s4279_s16   ;;  %p5597_p5 = scmp.ne.s32.totalorder (!%p5596_p0), %s5589_s21, 0 }
  0x4c   : > { %202 = sbr.rel (%p5596_p0) target bundleno = 1712 (0x6b0), region = 32  ;;  %s3493_s20 = sshll.u32 (!%p5596_p0), %s4473_s11, 6 }
  0x4d   : > { %s205_s5 = scalar_lea.sflag (!%p5596_p0), [#allocation3], %s4473_s11  ;;  %s208_s29 = scalar_lea.vmem (!%p5596_p0), [#allocation2], %s3493_s20 }
  0x53   : > { %4258 = dma.done.wait (%p5597_p5), %s205_s5, 1024  }
  0x54   : > { %4260 = vsyncadd (%p5597_p5), %s205_s5, 4294966272  ;;  %p5598_p11 = scmp.eq.s32.totalorder %s4349_s19, 0 }
  0x56   : > { %4262 = dma.done.wait (%p5598_p11), [#allocation6], 512   ;;  %p5599_p2 = pmov %p5598_p11 }
  0x57   : > { %vm262_vm0 = vcmask 261120   ;;  %v251_v0 = vld [vmem:[#allocation5] sm:$0xff]  ;;  %v252_v1 = vld [vmem:[#allocation5 + $0x8] sm:$0xff]  ;;  %v253_v2 = vld [vmem:[#allocation5 + $0x10] sm:$0xff]  ;;  %s4293_s12 = smov 96   ;;  %vm428_vm1 = vcmask 64512  }
  0x58   : > { %4264 = vsyncadd (%p5599_p2), [#allocation6], 4294966784  ;;  %v3853_v3 = vpack.c.bf16 %v252_v1, %v251_v0  ;;  %v254_v4 = vld [vmem:[#allocation5 + $0x18] sm:$0xff]  ;;  %v243_v5 = vld [vmem:[%s208_s29] sm:$0xff]  ;;  %s4294_s13 = smov 64   ;;  %vm4296_vm2 = vmmov 0  }
  0x59   : > { %v3857_v6 = vpack.c.bf16 %v254_v4, %v253_v2  ;;  %3689 = vmatprep.mubr.msk.f32.mxu0 %vm262_vm0, %v243_v5  ;;  %v244_v7 = vld [vmem:[%s208_s29 + $0x8] sm:$0xff]  ;;  %v245_v8 = vld [vmem:[%s208_s29 + $0x10] sm:$0xff]  ;;  %v246_v9 = vld [vmem:[%s208_s29 + $0x18] sm:$0xff]  ;;  %s4300_s9 = smov 32   ;;  %vm2658_vm4 = vcmask 523264   ;;  %vm2660_vm5 = vcmask 785408  }
  0x5a   : > { %3854 = vmatprep.subr.bf16.mxu0 %v3853_v3  ;;  %v247_v10 = vld [vmem:[%s208_s29 + $0x20] sm:$0xff]  ;;  %v248_v11 = vld [vmem:[%s208_s29 + $0x28] sm:$0xff]  ;;  %v249_v12 = vld [vmem:[%s208_s29 + $0x30] sm:$0xff]  ;;  %s5409_s28 = scalar_lea.vmem [#allocation8], %s3493_s20  ;;  %s3495_s10 = sshll.u32 %s4473_s11, 4 }
  0x5b   : > { %3856 = vmatpush3.bf16.msra.mxu0 %v3853_v3  ;;  %v250_v13 = vld [vmem:[%s208_s29 + $0x38] sm:$0xff]  ;;  %v3497_v14 = vld [vmem:[%s5583_s2] ss:$0 sm:$0xff]  ;;  %vm4879_vm3 = vmpackc.low %vm262_vm0, %vm262_vm0  ;;  %s234_s6 = scalar_lea.vmem [#allocation7], %s3495_s10  ;;  %s3587_s26 = sshll.u32 %s4349_s19, 8 }
  0x5c   : > { %3858 = vmatprep.subr.bf16.mxu0 %v3857_v6  ;;  %s3359_s7 = sshll.u32 %s234_s6, 4  ;;  %s5497_s14 = scalar_lea.hbm %s5584_s3, %s3587_s26  ;;  %s5499_s7 = int_to_ptr.vmem [resolvable:$true] %s3359_s7 }
  0x5d   : > { %s3588_s20 = sshll.u32 %s4349_s19, 10  ;;  %s3373_s5 = sshll.u32 %s5409_s28, 4  ;;  %s5537_s5 = int_to_ptr.vmem [resolvable:$true] %s3373_s5 }
  0x5e   : > { %s3340_s29 = scalar_lea.sflag [#allocation4], %s4473_s11  ;;  %s4185_s21 = scalar_lea.vmem %s5499_s7, 256 }
  0x5f   : > { %3860 = vmatpush3.bf16.msra.mxu0 %v3857_v6  ;;  %p4186_p4 = scmp.ne.s32.totalorder %s5499_s7, %s4185_s21  ;;  %s4301_s23 = smov [#allocation7]  }
  0x61   : > { %p4187_p6 = pnand %p4186_p4, %p4422_p12 }
  0x62   : > { %3690 = vmatmul.mubr.msk.f32.vlgmr.msra.gmra.mrb[0].mxu0 %vm262_vm0, %v244_v7 }
  0x63   : > { %3692 = vmatprep.mubr.msk.f32.mxu0 %vm262_vm0, %v245_v8  ;;  %p4188_p8 = pneg %p4187_p6 }
  0x66   : > { %3693 = vmatmul.mubr.msk.f32.gmra.mrb[2].mxu0 %vm262_vm0, %v246_v9 }
  0x67   : > { %3695 = vmatprep.mubr.msk.f32.mxu0 %vm262_vm0, %v247_v10 }
  0x6a   : > { %3696 = vmatmul.mubr.msk.f32.gmra.mrb[4].mxu0 %vm262_vm0, %v248_v11 }
  0x6b   : > { %3698 = vmatprep.mubr.msk.f32.mxu0 %vm262_vm0, %v249_v12 }
  0x6e   : > { %3699 = vmatmul.mubr.msk.f32.gmra.mrb[6].mxu0 %vm262_vm0, %v250_v13 }
 0x135   : > { %v3691_v15 = vpop.f32.mrb[0].mxu0 }
 0x136   : > { %v4498_v16 = vadd.f32 %v3691_v15, %v3497_v14  ;;  %v353_v17 = vpop.f32.mrb[1].mxu0 }
 0x137   : > { %v4500_v18 = vadd.f32 %v3497_v14, %v353_v17 }
 0x138   : > { %559 = vrot.lane.b32.xlu0 %v4498_v16, %s4293_s12 }
 0x139   : > { %392 = vxpose.xlu1.b32.start.end [1/1] (short) (narrow) %v4500_v18, 32  ;;  %v3694_v19 = vpop.f32.mrb[2].mxu0 }
 0x13a   : > { %v363_v20 = vpop.f32.mrb[3].mxu0  ;;  %v4511_v26 = vadd.f32 %v3694_v19, %v3497_v14 }
 0x13b   : > { %v4519_v30 = vadd.f32 %v3497_v14, %v363_v20 }
 0x13c   : > { %425 = vrot.lane.b32.xlu0 %v4500_v18, %s4293_s12 }
 0x13d   : > { %v3697_v21 = vpop.f32.mrb[4].mxu0 }
 0x13e   : > { %v4507_v22 = vadd.f32 %v3697_v21, %v3497_v14  ;;  %v373_v23 = vpop.f32.mrb[5].mxu0 }
 0x13f   : > { %v4509_v24 = vadd.f32 %v3497_v14, %v373_v23 }
 0x141   : > { %v3700_v25 = vpop.f32.mrb[6].mxu0 }
 0x142   : > { %v4513_v27 = vadd.f32 %v3700_v25, %v3497_v14  ;;  %v383_v28 = vpop.f32.mrb[7].mxu0 }
 0x143   : > { %v4515_v29 = vadd.f32 %v3497_v14, %v383_v28 }
 0x146   : > { %792 = vxpose.xlu1.b32.start.end [1/1] (short) (narrow) %v4511_v26, 32 }
 0x15a   : > { %526 = vxpose.xlu0.b32.start.end [1/1] (short) (narrow) %v4498_v16, 32 }
 0x170   : > { %692 = vrot.lane.b32.xlu1 %v4519_v30, %s4293_s12 }
 0x18f   : > { %825 = vrot.lane.b32.xlu0 %v4511_v26, %s4293_s12 }
 0x193   : > { %958 = vrot.lane.b32.xlu0 %v4509_v24, %s4293_s12 }
 0x197   : > { %1357 = vrot.lane.b32.xlu0 %v4513_v27, %s4293_s12 }
 0x199   : > { %659 = vxpose.xlu1.b32.start.end [1/1] (short) (narrow) %v4519_v30, 32 }
 0x19b   : > { %1224 = vrot.lane.b32.xlu0 %v4515_v29, %s4293_s12 }
 0x1aa   : > { %v560_v31 = vpop.permute.xlu0 %559 }
 0x1ae   : > { %v426_v32 = vpop.permute.xlu0 %425 }
 0x1af   : > { %3701 = vmatprep.subr.mxu1 %v426_v32 }
 0x1b0   : > { %3702 = vmatpush3.msra.mxu1 %v426_v32 }
 0x1b1   : > { %3709 = vmatprep.subr.mxu1 %v560_v31 }
 0x1b9   : > { %v408_v33 = vpop.trf.xlu1  ;;  %925 = vxpose.xlu0.b32.start.end [1/1] (short) (narrow) %v4509_v24, 32 }
 0x1ba   : > { %3703 = vmatprep.mubr.msk.f32.mxu1 %vm428_vm1, %v408_v33 }
 0x1bd   : > { %v409_v34 = vpop.trf.xlu1 }
 0x1be   : > { %3704 = vmatmul.mubr.msk.f32.vlgmr.msra.gmra.mrb[0].mxu1 %vm428_vm1, %v409_v34 }
 0x1bf   : > { %3710 = vmatpush3.msra.mxu1 %v560_v31 }
 0x1c1   : > { %v410_v35 = vpop.trf.xlu1 }
 0x1c2   : > { %3706 = vmatprep.mubr.msk.f32.mxu1 %vm428_vm1, %v410_v35 }
 0x1c3   : > { %1091 = vrot.lane.b32.xlu1 %v4507_v22, %s4293_s12 }
 0x1c5   : > { %v411_v36 = vpop.trf.xlu1 }
 0x1c6   : > { %3707 = vmatmul.mubr.msk.f32.gmra.mrb[2].mxu1 %vm428_vm1, %v411_v36 }
 0x1c9   : > { %v808_v37 = vpop.trf.xlu1 }
 0x1ca   : > { %3727 = vmatprep.mubr.msk.f32.mxu0 %vm428_vm1, %v808_v37 }
 0x1cd   : > { %v809_v38 = vpop.trf.xlu1 }
 0x1d1   : > { %v810_v39 = vpop.trf.xlu1 }
 0x1d5   : > { %v811_v41 = vpop.trf.xlu1 }
 0x1da   : > { %v542_v40 = vpop.trf.xlu0 }
 0x1db   : > { %3711 = vmatprep.mubr.msk.f32.mxu1 %vm428_vm1, %v542_v40 }
 0x1de   : > { %v543_v42 = vpop.trf.xlu0 }
 0x1df   : > { %3712 = vmatmul.mubr.msk.f32.vlgmr.msra.gmra.mrb[4].mxu1 %vm428_vm1, %v543_v42 }
 0x1e2   : > { %v693_v43 = vpop.permute.xlu1 %692  ;;  %v544_v44 = vpop.trf.xlu0 }
 0x1e3   : > { %3717 = vmatprep.subr.mxu1 %v693_v43  ;;  %3714 = vmatprep.mubr.msk.f32.mxu1 %vm428_vm1, %v544_v44 }
 0x1e4   : > { %3718 = vmatpush3.msra.mxu1 %v693_v43 }
 0x1e6   : > { %v545_v45 = vpop.trf.xlu0 }
 0x1e7   : > { %3715 = vmatmul.mubr.msk.f32.gmra.mrb[6].mxu1 %vm428_vm1, %v545_v45 }
 0x1ec   : > { %1058 = vxpose.xlu1.b32.start.end [1/1] (short) (narrow) %v4507_v22, 32 }
 0x1f9   : > { %1191 = vxpose.xlu1.b32.start.end [1/1] (short) (narrow) %v4515_v29, 32 }
 0x201   : > { %v826_v46 = vpop.permute.xlu0 %825 }
 0x202   : > { %3725 = vmatprep.subr.mxu0 %v826_v46  ;;  %3925 = vmatprep.subr.mxu1 %v826_v46 }
 0x203   : > { %3726 = vmatpush3.msra.mxu0 %v826_v46 }
 0x204   : > { %3728 = vmatmul.mubr.msk.f32.vlgmr.msra.gmra.mrb[8].mxu0 %vm428_vm1, %v809_v38 }
 0x205   : > { %v959_v49 = vpop.permute.xlu0 %958 }
 0x206   : > { %1324 = vxpose.xlu1.b32.start.end [1/1] (short) (narrow) %v4513_v27, 32 }
 0x209   : > { %v1358_v52 = vpop.permute.xlu0 %1357 }
 0x20d   : > { %v1225_v53 = vpop.permute.xlu0 %1224 }
 0x219   : > { %v675_v47 = vpop.trf.xlu1 }
 0x21a   : > { %3719 = vmatprep.mubr.msk.f32.mxu1 %vm428_vm1, %v675_v47 }
 0x21d   : > { %v676_v48 = vpop.trf.xlu1 }
 0x21e   : > { %3720 = vmatmul.mubr.msk.f32.vlgmr.msra.gmra.mrb[8].mxu1 %vm428_vm1, %v676_v48 }
 0x21f   : > { %3926 = vmatpush3.msra.mxu1 %v826_v46 }
 0x220   : > { %3733 = vmatprep.subr.mxu1 %v959_v49 }
 0x221   : > { %v677_v50 = vpop.trf.xlu1 }
 0x222   : > { %3722 = vmatprep.mubr.msk.f32.mxu1 %vm428_vm1, %v677_v50 }
 0x225   : > { %v678_v51 = vpop.trf.xlu1 }
 0x226   : > { %3723 = vmatmul.mubr.msk.f32.gmra.mrb[10].mxu1 %vm428_vm1, %v678_v51 }
 0x227   : > { %3730 = vmatprep.mubr.msk.f32.mxu1 %vm428_vm1, %v810_v39 }
 0x22a   : > { %3731 = vmatmul.mubr.msk.f32.vlgmr.msra.gmra.mrb[12].mxu1 %vm428_vm1, %v811_v41 }
 0x22b   : > { %3734 = vmatpush3.msra.mxu1 %v959_v49 }
 0x22c   : > { %3749 = vmatprep.subr.mxu1 %v1225_v53 }
 0x230   : > { %1809 = vrot.lane.b32.xlu1 %v4500_v18, %s4294_s13 }
 0x235   : > { %v1092_v54 = vpop.permute.xlu1 %1091 }
 0x236   : > { %3741 = vmatprep.subr.mxu0 %v1092_v54 }
 0x237   : > { %3742 = vmatpush3.msra.mxu0 %v1092_v54 }
 0x238   : > { %3757 = vmatprep.subr.mxu0 %v1358_v52 }
 0x239   : > { %v941_v55 = vpop.trf.xlu0 }
 0x23a   : > { %3735 = vmatprep.mubr.msk.f32.mxu1 %vm428_vm1, %v941_v55 }
 0x23d   : > { %v942_v56 = vpop.trf.xlu0 }
 0x23e   : > { %3736 = vmatmul.mubr.msk.f32.vlgmr.msra.gmra.mrb[14].mxu1 %vm428_vm1, %v942_v56 }
 0x23f   : > { %3750 = vmatpush3.msra.mxu1 %v1225_v53 }
 0x241   : > { %v943_v57 = vpop.trf.xlu0 }
 0x242   : > { %3738 = vmatprep.mubr.msk.f32.mxu1 %vm428_vm1, %v943_v57 }
 0x245   : > { %v944_v58 = vpop.trf.xlu0 }
 0x246   : > { %3739 = vmatmul.mubr.msk.f32.gmra.mrb[16].mxu1 %vm428_vm1, %v944_v58 }
 0x26c   : > { %v1074_v59 = vpop.trf.xlu1 }
 0x26d   : > { %3743 = vmatprep.mubr.msk.f32.mxu0 %vm428_vm1, %v1074_v59 }
 0x270   : > { %v1075_v60 = vpop.trf.xlu1 }
 0x271   : > { %3744 = vmatmul.mubr.msk.f32.vlgmr.msra.gmra.mrb[10].mxu0 %vm428_vm1, %v1075_v60 }
 0x272   : > { %3758 = vmatpush3.msra.mxu0 %v1358_v52 }
 0x274   : > { %v1076_v61 = vpop.trf.xlu1 }
 0x275   : > { %3746 = vmatprep.mubr.msk.f32.mxu0 %vm428_vm1, %v1076_v61 }
 0x278   : > { %v1077_v62 = vpop.trf.xlu1 }
 0x279   : > { %3747 = vmatmul.mubr.msk.f32.gmra.mrb[12].mxu0 %vm428_vm1, %v1077_v62 }
 0x27c   : > { %v1207_v63 = vpop.trf.xlu1 }
 0x27d   : > { %3751 = vmatprep.mubr.msk.f32.mxu1 %vm428_vm1, %v1207_v63 }
 0x280   : > { %v1208_v0 = vpop.trf.xlu1 }
 0x281   : > { %3752 = vmatmul.mubr.msk.f32.vlgmr.msra.gmra.mrb[18].mxu1 %vm428_vm1, %v1208_v0 }
 0x284   : > { %v1209_v1 = vpop.trf.xlu1 }
 0x285   : > { %3754 = vmatprep.mubr.msk.f32.mxu1 %vm428_vm1, %v1209_v1 }
 0x288   : > { %v1210_v2 = vpop.trf.xlu1 }
 0x289   : > { %3755 = vmatmul.mubr.msk.f32.gmra.mrb[20].mxu1 %vm428_vm1, %v1210_v2 }
 0x28c   : > { %v1340_v3 = vpop.trf.xlu1 }
 0x28d   : > { %3759 = vmatprep.mubr.msk.f32.mxu0 %vm428_vm1, %v1340_v3 }
 0x290   : > { %v1341_v4 = vpop.trf.xlu1 }
 0x291   : > { %v4569_v5 = vpop.f32.mrb[0].mxu1  ;;  %3760 = vmatmul.mubr.msk.f32.vlgmr.msra.gmra.mrb[14].mxu0 %vm428_vm1, %v1341_v4 }
 0x292   : > { %v4572_v6 = vpop.f32.mrb[1].mxu1  ;;  %v1460_v7 = vsel %vm262_vm0, %v4569_v5, -inf }
 0x293   : > { %1461 = vmax.xlane.f32.xlu1 %v1460_v7  ;;  %v1457_v8 = vsel %vm262_vm0, %v4572_v6, -inf }
 0x294   : > { %v1342_v9 = vpop.trf.xlu1  ;;  %1458 = vmax.xlane.f32.xlu0 %v1457_v8 }
 0x295   : > { %3762 = vmatprep.mubr.msk.f32.mxu0 %vm428_vm1, %v1342_v9 }
 0x298   : > { %v1343_v10 = vpop.trf.xlu1 }
 0x299   : > { %3763 = vmatmul.mubr.msk.f32.gmra.mrb[16].mxu0 %vm428_vm1, %v1343_v10  ;;  %v4580_v11 = vpop.f32.mrb[2].mxu1 }
 0x29a   : > { %v4582_v12 = vpop.f32.mrb[3].mxu1  ;;  %v1466_v23 = vsel %vm262_vm0, %v4580_v11, -inf }
 0x29b   : > { %v1463_v25 = vsel %vm262_vm0, %v4582_v12, -inf }
 0x2b2   : > { %v4584_v13 = vpop.f32.mrb[4].mxu1 }
 0x2b3   : > { %v4586_v14 = vpop.f32.mrb[5].mxu1  ;;  %v1472_v44 = vsel %vm262_vm0, %v4584_v13, -inf }
 0x2b4   : > { %v1469_v47 = vsel %vm262_vm0, %v4586_v14, -inf }
 0x2ba   : > { %v4588_v15 = vpop.f32.mrb[6].mxu1 }
 0x2bb   : > { %v4590_v17 = vpop.f32.mrb[7].mxu1  ;;  %v1478_v53 = vsel %vm262_vm0, %v4588_v15, -inf }
 0x2bc   : > { %v1475_v50 = vsel %vm262_vm0, %v4590_v17, -inf }
 0x2d7   : > { %v4592_v18 = vpop.f32.mrb[8].mxu0 }
 0x2d8   : > { %v4594_v19 = vpop.f32.mrb[9].mxu0  ;;  %v1496_v20 = vsel %vm262_vm0, %v4592_v18, -inf }
 0x2d9   : > { %1497 = vmax.xlane.f32.xlu0 %v1496_v20  ;;  %v1493_v21 = vsel %vm262_vm0, %v4594_v19, -inf }
 0x2da   : > { %1494 = vmax.xlane.f32.xlu1 %v1493_v21 }
 0x2dd   : > { %1467 = vmax.xlane.f32.xlu0 %v1466_v23  ;;  %v4698_v23 = vpop.permute.xlu1 %1809 }
 0x2de   : > { %1464 = vmax.xlane.f32.xlu1 %v1463_v25 }
 0x2f1   : > { %v4604_v28 = vpop.f32.mrb[8].mxu1 }
 0x2f2   : > { %v4606_v31 = vpop.f32.mrb[9].mxu1  ;;  %v1484_v60 = vsel %vm262_vm0, %v4604_v28, -inf }
 0x2f3   : > { %v1481_v61 = vsel %vm262_vm0, %v4606_v31, -inf }
 0x2f9   : > { %v4608_v32 = vpop.f32.mrb[10].mxu1 }
 0x2fa   : > { %v4610_v33 = vpop.f32.mrb[11].mxu1  ;;  %v1490_v2 = vsel %vm262_vm0, %v4608_v32, -inf }
 0x2fb   : > { %v1487_v3 = vsel %vm262_vm0, %v4610_v33, -inf }
 0x2fd   : > { %v4612_v34 = vpop.f32.mrb[12].mxu1 }
 0x2fe   : > { %v4614_v35 = vpop.f32.mrb[13].mxu1  ;;  %v1502_v4 = vsel %vm262_vm0, %v4612_v34, -inf }
 0x2ff   : > { %v1499_v7 = vsel %vm262_vm0, %v4614_v35, -inf }
 0x311   : > { %v4616_v36 = vpop.f32.mrb[14].mxu1 }
 0x312   : > { %v4618_v37 = vpop.f32.mrb[15].mxu1  ;;  %v1508_v8 = vsel %vm262_vm0, %v4616_v36, -inf }
 0x313   : > { %v1505_v9 = vsel %vm262_vm0, %v4618_v37, -inf }
 0x319   : > { %v4620_v38 = vpop.f32.mrb[16].mxu1 }
 0x31a   : > { %v4622_v39 = vpop.f32.mrb[17].mxu1  ;;  %v1514_v10 = vsel %vm262_vm0, %v4620_v38, -inf }
 0x31b   : > { %v1511_v20 = vsel %vm262_vm0, %v4622_v39, -inf }
 0x321   : > { %v1459_v25 = vpop.xlane.xlu0 %1458 }
 0x344   : > { %v4624_v40 = vpop.f32.mrb[10].mxu0 }
 0x345   : > { %v4626_v41 = vpop.f32.mrb[11].mxu0  ;;  %v1520_v42 = vsel %vm262_vm0, %v4624_v40, -inf }
 0x346   : > { %1521 = vmax.xlane.f32.xlu0 %v1520_v42  ;;  %v1517_v43 = vsel %vm262_vm0, %v4626_v41, -inf  ;;  %v1462_v42 = vpop.xlane.xlu1 %1461 }
 0x347   : > { %1518 = vmax.xlane.f32.xlu1 %v1517_v43 }
 0x34a   : > { %1473 = vmax.xlane.f32.xlu0 %v1472_v44  ;;  %v1554_v44 = vsub.f32 %v4569_v5, %v1462_v42 }
 0x34c   : > { %v4634_v45 = vpop.f32.mrb[12].mxu0 }
 0x34d   : > { %v4636_v46 = vpop.f32.mrb[13].mxu0  ;;  %v1526_v49 = vsel %vm262_vm0, %v4634_v45, -inf }
 0x34e   : > { %1470 = vmax.xlane.f32.xlu0 %v1469_v47  ;;  %v1523_v48 = vsel %vm262_vm0, %v4636_v46, -inf }
 0x34f   : > { %1524 = vmax.xlane.f32.xlu1 %v1523_v48  ;;  %v1553_v48 = vsub.f32 %v4572_v6, %v1459_v25 }
 0x352   : > { %1527 = vmax.xlane.f32.xlu0 %v1526_v49  ;;  %v1587_v49 = vmul.f32 1.442695, %v1554_v44 }
 0x353   : > { %1476 = vmax.xlane.f32.xlu1 %v1475_v50 }
 0x354   : > { %v4646_v51 = vpop.f32.mrb[18].mxu1  ;;  %3999 = vpow2.f32 %v1587_v49 }
 0x355   : > { %v4648_v52 = vpop.f32.mrb[19].mxu1  ;;  %v1532_v21 = vsel %vm262_vm0, %v4646_v51, -inf }
 0x356   : > { %1479 = vmax.xlane.f32.xlu0 %v1478_v53  ;;  %v1585_v53 = vmul.f32 1.442695, %v1553_v48 }
 0x358   : > { %4001 = vpow2.f32 %v1585_v53 }
 0x35c   : > { %v4652_v54 = vpop.f32.mrb[20].mxu1 }
 0x35d   : > { %v4654_v55 = vpop.f32.mrb[21].mxu1 }
 0x364   : > { %v4656_v56 = vpop.f32.mrb[14].mxu0 }
 0x365   : > { %v4658_v57 = vpop.f32.mrb[15].mxu0  ;;  %v1544_v58 = vsel %vm262_vm0, %v4656_v56, -inf }
 0x366   : > { %1545 = vmax.xlane.f32.xlu0 %v1544_v58  ;;  %v1541_v59 = vsel %vm262_vm0, %v4658_v57, -inf  ;;  %v1498_v43 = vpop.xlane.xlu0 %1497 }
 0x367   : > { %1542 = vmax.xlane.f32.xlu1 %v1541_v59  ;;  %v1495_v47 = vpop.xlane.xlu1 %1494  ;;  %v1566_v50 = vsub.f32 %v4592_v18, %v1498_v43  ;;  %v1529_v18 = vsel %vm262_vm0, %v4648_v52, -inf }
 0x368   : > { %v1565_v58 = vsub.f32 %v4594_v19, %v1495_v47  ;;  %v1538_v19 = vsel %vm262_vm0, %v4652_v54, -inf }
 0x36a   : > { %1485 = vmax.xlane.f32.xlu0 %v1484_v60 }
 0x36b   : > { %1482 = vmax.xlane.f32.xlu1 %v1481_v61  ;;  %v1465_v59 = vpop.xlane.xlu1 %1464  ;;  %v1609_v61 = vmul.f32 1.442695, %v1565_v58 }
 0x36c   : > { %v4668_v62 = vpop.f32.mrb[16].mxu0 }
 0x36d   : > { %v4670_v63 = vpop.f32.mrb[17].mxu0  ;;  %v1550_v0 = vsel %vm262_vm0, %v4668_v62, -inf }
 0x36e   : > { %1551 = vmax.xlane.f32.xlu0 %v1550_v0  ;;  %v1547_v1 = vsel %vm262_vm0, %v4670_v63, -inf  ;;  %v1555_v0 = vsub.f32 %v4582_v12, %v1465_v59 }
 0x36f   : > { %1548 = vmax.xlane.f32.xlu1 %v1547_v1  ;;  %v4710_v1 = vpop.eup %3999 }
 0x370   : > { %v1589_v6 = vmul.f32 1.442695, %v1555_v0  ;;  %v4714_v12 = vpop.eup %4001 }
 0x372   : > { %1491 = vmax.xlane.f32.xlu0 %v1490_v2  ;;  %v1652_v2 = vsel %vm262_vm0, %v4710_v1, 0.0 }
 0x373   : > { %1488 = vmax.xlane.f32.xlu1 %v1487_v3 }
 0x376   : > { %1503 = vmax.xlane.f32.xlu0 %v1502_v4  ;;  %v1649_v4 = vsel %vm262_vm0, %v4714_v12, 0.0 }
 0x377   : > { %1500 = vmax.xlane.f32.xlu1 %v1499_v7 }
 0x37a   : > { %1509 = vmax.xlane.f32.xlu0 %v1508_v8 }
 0x37b   : > { %1506 = vmax.xlane.f32.xlu1 %v1505_v9 }
 0x37e   : > { %1515 = vmax.xlane.f32.xlu0 %v1514_v10 }
 0x37f   : > { %1512 = vmax.xlane.f32.xlu1 %v1511_v20 }
 0x382   : > { %1533 = vmax.xlane.f32.xlu0 %v1532_v21 }
 0x390   : > { %1981 = vrot.lane.b32.xlu1 %v4519_v30, %s4294_s13  ;;  %v1468_v30 = vpop.xlane.xlu0 %1467 }
 0x391   : > { %v1556_v60 = vsub.f32 %v4580_v11, %v1468_v30  ;;  %v1535_v11 = vsel %vm262_vm0, %v4654_v55, -inf  ;;  %v4295_v30 = vmov 0.0|0.0  }
 0x392   : > { %3861 = vmatprep.subr.bf16.mxu1 %v4295_v30  ;;  %3869 = vmatprep.subr.bf16.mxu0 %v4295_v30 }
 0x393   : > { %v1591_v5 = vmul.f32 1.442695, %v1556_v60 }
 0x398   : > { %1895 = vrot.lane.b32.xlu0 %v4498_v16, %s4294_s13  ;;  %v1611_v16 = vmul.f32 1.442695, %v1566_v50 }
 0x39a   : > { %4003 = vpow2.f32 %v1611_v16 }
 0x39b   : > { %4005 = vpow2.f32 %v1609_v61 }
 0x39c   : > { %4007 = vpow2.f32 %v1591_v5 }
 0x39d   : > { %4009 = vpow2.f32 %v1589_v6 }
 0x3a4   : > { %v4718_v3 = vpop.eup %4003 }
 0x3a5   : > { %v4722_v7 = vpop.eup %4005  ;;  %v1688_v8 = vsel %vm262_vm0, %v4718_v3, 0.0 }
 0x3a6   : > { %v4726_v9 = vpop.eup %4007  ;;  %v1685_v10 = vsel %vm262_vm0, %v4722_v7, 0.0 }
 0x3a7   : > { %v4730_v20 = vpop.eup %4009  ;;  %v1658_v21 = vsel %vm262_vm0, %v4726_v9, 0.0 }
 0x3a8   : > { %v1655_v25 = vsel %vm262_vm0, %v4730_v20, 0.0 }
 0x3b4   : > { %1530 = vmax.xlane.f32.xlu1 %v1529_v18 }
 0x3b7   : > { %1539 = vmax.xlane.f32.xlu0 %v1538_v19 }
 0x3b8   : > { %1536 = vmax.xlane.f32.xlu1 %v1535_v11 }
 0x3bb   : > { %1653 = vadd.xlane.f32.xlu0 %v1652_v2 }
 0x3bc   : > { %1650 = vadd.xlane.f32.xlu1 %v1649_v4 }
 0x3bf   : > { %1689 = vadd.xlane.f32.xlu0 %v1688_v8 }
 0x3c0   : > { %1686 = vadd.xlane.f32.xlu1 %v1685_v10 }
 0x3c3   : > { %1659 = vadd.xlane.f32.xlu0 %v1658_v21 }
 0x3c4   : > { %1656 = vadd.xlane.f32.xlu1 %v1655_v25 }
 0x3d3   : > { %v1522_v42 = vpop.xlane.xlu0 %1521 }
 0x3d4   : > { %v1574_v43 = vsub.f32 %v4624_v40, %v1522_v42  ;;  %v1519_v44 = vpop.xlane.xlu1 %1518 }
 0x3d5   : > { %v1573_v47 = vsub.f32 %v4626_v41, %v1519_v44 }
 0x3d6   : > { %v1627_v48 = vmul.f32 1.442695, %v1574_v43 }
 0x3d7   : > { %v1625_v49 = vmul.f32 1.442695, %v1573_v47  ;;  %v1474_v50 = vpop.xlane.xlu0 %1473 }
 0x3d8   : > { %4011 = vpow2.f32 %v1627_v48  ;;  %v1558_v53 = vsub.f32 %v4584_v13, %v1474_v50 }
 0x3d9   : > { %4013 = vpow2.f32 %v1625_v49 }
 0x3da   : > { %v1595_v58 = vmul.f32 1.442695, %v1558_v53 }
 0x3db   : > { %v1471_v59 = vpop.xlane.xlu0 %1470 }
 0x3dc   : > { %4015 = vpow2.f32 %v1595_v58  ;;  %v1557_v40 = vsub.f32 %v4586_v14, %v1471_v59  ;;  %v1525_v16 = vpop.xlane.xlu1 %1524 }
 0x3dd   : > { %v1575_v41 = vsub.f32 %v4636_v46, %v1525_v16 }
 0x3de   : > { %v1593_v60 = vmul.f32 1.442695, %v1557_v40 }
 0x3df   : > { %v1629_v61 = vmul.f32 1.442695, %v1575_v41  ;;  %v1528_v0 = vpop.xlane.xlu0 %1527 }
 0x3e0   : > { %4017 = vpow2.f32 %v1593_v60  ;;  %v1576_v13 = vsub.f32 %v4634_v45, %v1528_v0  ;;  %v1477_v5 = vpop.xlane.xlu1 %1476 }
 0x3e1   : > { %v1559_v6 = vsub.f32 %v4590_v17, %v1477_v5  ;;  %4019 = vpow2.f32 %v1629_v61  ;;  %v4297_v17 = vmov 0.0  }
 0x3e2   : > { %v4745_v18 = vpop.eup %4011  ;;  %v1631_v19 = vmul.f32 1.442695, %v1576_v13  ;;  %3773 = vmatprep.mubr.msk.f32.mxu1 %vm4296_vm2, %v4297_v17  ;;  %3784 = vmatprep.mubr.msk.f32.mxu0 %vm4296_vm2, %v4297_v17 }
 0x3e3   : > { %v4747_v11 = vpop.eup %4013  ;;  %v1597_v2 = vmul.f32 1.442695, %v1559_v6  ;;  %v1480_v14 = vpop.xlane.xlu0 %1479  ;;  %v1712_v46 = vsel %vm262_vm0, %v4745_v18, 0.0 }
 0x3e4   : > { %4021 = vpow2.f32 %v1631_v19  ;;  %v1560_v4 = vsub.f32 %v4588_v15, %v1480_v14  ;;  %1713 = vadd.xlane.f32.xlu0 %v1712_v46  ;;  %v1709_v45 = vsel %vm262_vm0, %v4747_v11, 0.0 }
 0x3e5   : > { %1710 = vadd.xlane.f32.xlu1 %v1709_v45  ;;  %4023 = vpow2.f32 %v1597_v2 }
 0x3e6   : > { %v4758_v8 = vpop.eup %4015  ;;  %v1599_v10 = vmul.f32 1.442695, %v1560_v4 }
 0x3e7   : > { %v1664_v15 = vsel %vm262_vm0, %v4758_v8, 0.0 }
 0x3e8   : > { %4025 = vpow2.f32 %v1599_v10  ;;  %1665 = vadd.xlane.f32.xlu0 %v1664_v15 }
 0x3ea   : > { %v4762_v21 = vpop.eup %4017 }
 0x3eb   : > { %v1661_v25 = vsel %vm262_vm0, %v4762_v21, 0.0  ;;  %v4766_v42 = vpop.eup %4019 }
 0x3ec   : > { %1662 = vadd.xlane.f32.xlu1 %v1661_v25  ;;  %v1715_v44 = vsel %vm262_vm0, %v4766_v42, 0.0 }
 0x3ee   : > { %v4768_v43 = vpop.eup %4021 }
 0x3ef   : > { %v1718_v47 = vsel %vm262_vm0, %v4768_v43, 0.0  ;;  %v4774_v48 = vpop.eup %4023 }
 0x3f0   : > { %1716 = vadd.xlane.f32.xlu1 %v1715_v44  ;;  %1719 = vadd.xlane.f32.xlu0 %v1718_v47  ;;  %v1667_v53 = vsel %vm262_vm0, %v4774_v48, 0.0 }
 0x3f2   : > { %v4776_v49 = vpop.eup %4025 }
 0x3f3   : > { %v1546_v50 = vpop.xlane.xlu0 %1545  ;;  %v1670_v58 = vsel %vm262_vm0, %v4776_v49, 0.0 }
 0x3f4   : > { %v1582_v59 = vsub.f32 %v4656_v56, %v1546_v50  ;;  %v1543_v40 = vpop.xlane.xlu1 %1542  ;;  %1668 = vadd.xlane.f32.xlu1 %v1667_v53  ;;  %1671 = vadd.xlane.f32.xlu0 %v1670_v58 }
 0x3f5   : > { %v1581_v16 = vsub.f32 %v4658_v57, %v1543_v40 }
 0x3f6   : > { %v1643_v41 = vmul.f32 1.442695, %v1582_v59 }
 0x3f7   : > { %v1641_v60 = vmul.f32 1.442695, %v1581_v16  ;;  %v1486_v61 = vpop.xlane.xlu0 %1485 }
 0x3f8   : > { %4027 = vpow2.f32 %v1643_v41  ;;  %v1562_v0 = vsub.f32 %v4604_v28, %v1486_v61  ;;  %v1483_v13 = vpop.xlane.xlu1 %1482 }
 0x3f9   : > { %4029 = vpow2.f32 %v1641_v60  ;;  %v1561_v5 = vsub.f32 %v4606_v31, %v1483_v13 }
 0x3fa   : > { %v1603_v6 = vmul.f32 1.442695, %v1562_v0 }
 0x3fb   : > { %v1601_v19 = vmul.f32 1.442695, %v1561_v5  ;;  %v1552_v2 = vpop.xlane.xlu0 %1551 }
 0x3fc   : > { %4031 = vpow2.f32 %v1603_v6  ;;  %v1584_v56 = vsub.f32 %v4668_v62, %v1552_v2  ;;  %v1549_v14 = vpop.xlane.xlu1 %1548 }
 0x3fd   : > { %4033 = vpow2.f32 %v1601_v19  ;;  %v1583_v57 = vsub.f32 %v4670_v63, %v1549_v14 }
 0x3fe   : > { %v1647_v46 = vmul.f32 1.442695, %v1584_v56 }
 0x3ff   : > { %v1645_v4 = vmul.f32 1.442695, %v1583_v57  ;;  %v1492_v45 = vpop.xlane.xlu0 %1491 }
 0x400   : > { %4035 = vpow2.f32 %v1647_v46  ;;  %v1564_v28 = vsub.f32 %v4608_v32, %v1492_v45  ;;  %v1489_v10 = vpop.xlane.xlu1 %1488 }
 0x401   : > { %4037 = vpow2.f32 %v1645_v4  ;;  %v1563_v31 = vsub.f32 %v4610_v33, %v1489_v10 }
 0x402   : > { %v4790_v15 = vpop.eup %4027  ;;  %v1607_v25 = vmul.f32 1.442695, %v1564_v28 }
 0x403   : > { %v4792_v44 = vpop.eup %4029  ;;  %v1605_v62 = vmul.f32 1.442695, %v1563_v31  ;;  %v1504_v47 = vpop.xlane.xlu0 %1503  ;;  %v1736_v63 = vsel %vm262_vm0, %v4790_v15, 0.0 }
 0x404   : > { %4039 = vpow2.f32 %v1607_v25  ;;  %v1568_v50 = vsub.f32 %v4612_v34, %v1504_v47  ;;  %v1501_v53 = vpop.xlane.xlu1 %1500  ;;  %1737 = vadd.xlane.f32.xlu0 %v1736_v63  ;;  %v1733_v32 = vsel %vm262_vm0, %v4792_v44, 0.0 }
 0x405   : > { %4041 = vpow2.f32 %v1605_v62  ;;  %v1567_v33 = vsub.f32 %v4614_v35, %v1501_v53  ;;  %1734 = vadd.xlane.f32.xlu1 %v1733_v32 }
 0x406   : > { %v4800_v58 = vpop.eup %4031  ;;  %v1615_v59 = vmul.f32 1.442695, %v1568_v50 }
 0x407   : > { %v4802_v40 = vpop.eup %4033  ;;  %v1613_v16 = vmul.f32 1.442695, %v1567_v33  ;;  %v1510_v41 = vpop.xlane.xlu0 %1509  ;;  %v1676_v60 = vsel %vm262_vm0, %v4800_v58, 0.0 }
 0x408   : > { %4043 = vpow2.f32 %v1615_v59  ;;  %v1570_v34 = vsub.f32 %v4616_v36, %v1510_v41  ;;  %v1507_v61 = vpop.xlane.xlu1 %1506  ;;  %1677 = vadd.xlane.f32.xlu0 %v1676_v60  ;;  %v1673_v0 = vsel %vm262_vm0, %v4802_v40, 0.0 }
 0x409   : > { %4045 = vpow2.f32 %v1613_v16  ;;  %v1569_v35 = vsub.f32 %v4618_v37, %v1507_v61  ;;  %1674 = vadd.xlane.f32.xlu1 %v1673_v0 }
 0x40a   : > { %v4810_v13 = vpop.eup %4035  ;;  %v1619_v5 = vmul.f32 1.442695, %v1570_v34 }
 0x40b   : > { %v4812_v6 = vpop.eup %4037  ;;  %v1617_v19 = vmul.f32 1.442695, %v1569_v35  ;;  %v1516_v2 = vpop.xlane.xlu0 %1515  ;;  %v1742_v56 = vsel %vm262_vm0, %v4810_v13, 0.0 }
 0x40c   : > { %4047 = vpow2.f32 %v1619_v5  ;;  %v1572_v36 = vsub.f32 %v4620_v38, %v1516_v2  ;;  %v1513_v14 = vpop.xlane.xlu1 %1512  ;;  %1743 = vadd.xlane.f32.xlu0 %v1742_v56  ;;  %v1739_v57 = vsel %vm262_vm0, %v4812_v6, 0.0 }
 0x40d   : > { %4049 = vpow2.f32 %v1617_v19  ;;  %v1571_v37 = vsub.f32 %v4622_v39, %v1513_v14  ;;  %1740 = vadd.xlane.f32.xlu1 %v1739_v57 }
 0x40e   : > { %v4820_v46 = vpop.eup %4039  ;;  %v1623_v4 = vmul.f32 1.442695, %v1572_v36 }
 0x40f   : > { %v4822_v45 = vpop.eup %4041  ;;  %v1621_v28 = vmul.f32 1.442695, %v1571_v37  ;;  %v1534_v10 = vpop.xlane.xlu0 %1533  ;;  %v1682_v31 = vsel %vm262_vm0, %v4820_v46, 0.0 }
 0x410   : > { %4051 = vpow2.f32 %v1623_v4  ;;  %v1578_v38 = vsub.f32 %v4646_v51, %v1534_v10  ;;  %1683 = vadd.xlane.f32.xlu0 %v1682_v31  ;;  %v1679_v25 = vsel %vm262_vm0, %v4822_v45, 0.0  ;;  %v4857_v0 = vpop.permute.xlu1 %1981 }
 0x411   : > { %4053 = vpow2.f32 %v1621_v28  ;;  %1680 = vadd.xlane.f32.xlu1 %v1679_v25 }
 0x412   : > { %v4829_v39 = vpop.eup %4043  ;;  %v1635_v62 = vmul.f32 1.442695, %v1578_v38 }
 0x413   : > { %v4831_v47 = vpop.eup %4045  ;;  %v1694_v63 = vsel %vm262_vm0, %v4829_v39, 0.0  ;;  %v4859_v35 = vpop.permute.xlu0 %1895 }
 0x414   : > { %4055 = vpow2.f32 %v1635_v62  ;;  %1695 = vadd.xlane.f32.xlu0 %v1694_v63  ;;  %v1691_v50 = vsel %vm262_vm0, %v4831_v47, 0.0 }
 0x415   : > { %1692 = vadd.xlane.f32.xlu1 %v1691_v50 }
 0x416   : > { %v4837_v51 = vpop.eup %4047 }
 0x417   : > { %v4839_v53 = vpop.eup %4049  ;;  %v1700_v32 = vsel %vm262_vm0, %v4837_v51, 0.0 }
 0x418   : > { %1701 = vadd.xlane.f32.xlu0 %v1700_v32  ;;  %v1697_v33 = vsel %vm262_vm0, %v4839_v53, 0.0 }
 0x419   : > { %1698 = vadd.xlane.f32.xlu1 %v1697_v33 }
 0x41a   : > { %v4845_v59 = vpop.eup %4051 }
 0x41b   : > { %v4847_v16 = vpop.eup %4053  ;;  %v1706_v41 = vsel %vm262_vm0, %v4845_v59, 0.0 }
 0x41c   : > { %1707 = vadd.xlane.f32.xlu0 %v1706_v41  ;;  %v1703_v60 = vsel %vm262_vm0, %v4847_v16, 0.0 }
 0x41d   : > { %1704 = vadd.xlane.f32.xlu1 %v1703_v60 }
 0x41e   : > { %v4853_v34 = vpop.eup %4055 }
 0x41f   : > { %v1724_v61 = vsel %vm262_vm0, %v4853_v34, 0.0 }
 0x420   : > { %1725 = vadd.xlane.f32.xlu0 %v1724_v61 }
 0x441   : > { %v1531_v5 = vpop.xlane.xlu1 %1530 }
 0x442   : > { %v1577_v19 = vsub.f32 %v4648_v52, %v1531_v5 }
 0x444   : > { %v1633_v2 = vmul.f32 1.442695, %v1577_v19  ;;  %v1540_v56 = vpop.xlane.xlu0 %1539 }
 0x445   : > { %v1580_v36 = vsub.f32 %v4652_v54, %v1540_v56  ;;  %v1537_v14 = vpop.xlane.xlu1 %1536 }
 0x446   : > { %4057 = vpow2.f32 %v1633_v2 }
 0x447   : > { %v1639_v57 = vmul.f32 1.442695, %v1580_v36 }
 0x448   : > { %v1654_v37 = vpop.xlane.xlu0 %1653 }
 0x449   : > { %4059 = vpow2.f32 %v1639_v57  ;;  %v1651_v4 = vpop.xlane.xlu1 %1650 }
 0x44a   : > { %4061 = vrcp.f32 %v1654_v37 }
 0x44b   : > { %4063 = vrcp.f32 %v1651_v4 }
 0x44c   : > { %v1690_v28 = vpop.xlane.xlu0 %1689 }
 0x44d   : > { %v1687_v10 = vpop.xlane.xlu1 %1686 }
 0x450   : > { %v4863_v31 = vpop.eup %4057  ;;  %v1660_v38 = vpop.xlane.xlu0 %1659 }
 0x451   : > { %4065 = vrcp.f32 %v1660_v38  ;;  %v1657_v25 = vpop.xlane.xlu1 %1656  ;;  %v1721_v52 = vsel %vm262_vm0, %v4863_v31, 0.0 }
 0x452   : > { %4067 = vrcp.f32 %v1657_v25  ;;  %1722 = vadd.xlane.f32.xlu1 %v1721_v52 }
 0x453   : > { %v4867_v54 = vpop.eup %4059  ;;  %4069 = vrcp.f32 %v1687_v10 }
 0x454   : > { %v1730_v62 = vsel %vm262_vm0, %v4867_v54, 0.0  ;;  %v4062_v63 = vpop.eup %4061 }
 0x455   : > { %1731 = vadd.xlane.f32.xlu0 %v1730_v62  ;;  %v4064_v50 = vpop.eup %4063  ;;  %v4872_v32 = vmul.f32 %v4062_v63, %v4710_v1 }
 0x456   : > { %v4875_v33 = vmul.f32 %v4064_v50, %v4714_v12 }
 0x458   : > { %v3862_v60 = vpack.c.bf16 %v4872_v32, %v4875_v33 }
 0x45a   : > { %3864 = vmatpush3.bf16.xpose.msk.msra.mxu1 %vm4879_vm3, %v3862_v60 }
 0x45b   : > { %v4066_v61 = vpop.eup %4065  ;;  %3865 = vmatprep.subr.bf16.mxu1 %v4295_v30 }
 0x45c   : > { %v4068_v5 = vpop.eup %4067  ;;  %v4888_v1 = vmul.f32 %v4066_v61, %v4726_v9 }
 0x45d   : > { %v4892_v12 = vmul.f32 %v4068_v5, %v4730_v20  ;;  %v4070_v36 = vpop.eup %4069 }
 0x45f   : > { %v3866_v19 = vpack.c.bf16 %v4888_v1, %v4892_v12 }
 0x462   : > { %3868 = vmatpush3.bf16.xpose.msk.msra.mxu1 %vm4879_vm3, %v3866_v19 }
 0x463   : > { %2153 = vrot.lane.b32.xlu1 %v4509_v24, %s4294_s13  ;;  %3877 = vmatprep.subr.bf16.mxu1 %v4295_v30  ;;  %v1579_v24 = vsub.f32 %v4654_v55, %v1537_v14  ;;  %v4915_v55 = vmul.f32 %v4070_v36, %v4722_v7 }
 0x467   : > { %2239 = vrot.lane.b32.xlu1 %v4507_v22, %s4294_s13  ;;  %v1637_v22 = vmul.f32 1.442695, %v1579_v24 }
 0x469   : > { %3774 = vmatmul.mubr.msk.f32.vlgmr.msra.gmra.mrb[22].mxu1 %vm262_vm0, %v4698_v23 }
 0x46a   : > { %3795 = vmatprep.mubr.msk.f32.mxu1 %vm4296_vm2, %v4297_v17 }
 0x46b   : > { %2067 = vrot.lane.b32.xlu0 %v4511_v26, %s4294_s13 }
 0x46f   : > { %2411 = vrot.lane.b32.xlu0 %v4513_v27, %s4294_s13 }
 0x471   : > { %v4911_v9 = vpop.xlane.xlu0 %1713 }
 0x472   : > { %v1711_v20 = vpop.xlane.xlu1 %1710 }
 0x475   : > { %v1666_v2 = vpop.xlane.xlu0 %1665 }
 0x476   : > { %4071 = vrcp.f32 %v1666_v2 }
 0x479   : > { %v1663_v56 = vpop.xlane.xlu1 %1662 }
 0x47a   : > { %4073 = vrcp.f32 %v1663_v56 }
 0x47b   : > { %4075 = vpow2.f32 %v1637_v22 }
 0x47d   : > { %v1717_v23 = vpop.xlane.xlu1 %1716  ;;  %v1720_v26 = vpop.xlane.xlu0 %1719 }
 0x47e   : > { %4077 = vrcp.f32 %v1717_v23 }
 0x47f   : > { %4079 = vrcp.f32 %v1720_v26  ;;  %v4298_v26 = vmov 1983009808  }
 0x480   : > { %v4072_v27 = vpop.eup %4071  ;;  %v2500_v36 = vunpack.c.l.s4 %v4298_v26 }
 0x481   : > { %v1669_v57 = vpop.xlane.xlu1 %1668  ;;  %v1672_v37 = vpop.xlane.xlu0 %1671  ;;  %v4918_v14 = vmul.f32 %v4072_v27, %v4758_v8 }
 0x482   : > { %4081 = vrcp.f32 %v1669_v57  ;;  %v2502_v57 = vlaneseq }
 0x483   : > { %4083 = vrcp.f32 %v1672_v37 }
 0x484   : > { %v4074_v4 = vpop.eup %4073  ;;  %4085 = vrcp.f32 %v1690_v28 }
 0x485   : > { %v4921_v10 = vmul.f32 %v4074_v4, %v4762_v21  ;;  %v4923_v38 = vpop.eup %4075  ;;  %4087 = vrcp.f32 %v1711_v20 }
 0x486   : > { %v1727_v28 = vsel %vm262_vm0, %v4923_v38, 0.0 }
 0x487   : > { %v3870_v25 = vpack.c.bf16 %v4918_v14, %v4921_v10  ;;  %v2683_v52 = vcombine.low %v4921_v10, %v4915_v55  ;;  %v2684_v62 = vcombine.high %v4921_v10, %v4915_v55 }
 0x488   : > { %v4078_v7 = vpop.eup %4077 }
 0x489   : > { %v4080_v63 = vpop.eup %4079  ;;  %v4932_v8 = vmul.f32 %v4078_v7, %v4766_v42  ;;  %3872 = vmatpush3.bf16.xpose.msk.msra.mxu0 %vm4879_vm3, %v3870_v25  ;;  %v2501_v7 = vunpack.c.0.s8 %v2500_v36 }
 0x48a   : > { %v4937_v21 = vmul.f32 %v4080_v63, %v4768_v43  ;;  %3873 = vmatprep.subr.bf16.mxu0 %v4295_v30  ;;  %v4975_v63 = vshrl.u32 %v2502_v57, 7 }
 0x48b   : > { %1728 = vadd.xlane.f32.xlu1 %v1727_v28 }
 0x48c   : > { %v4082_v50 = vpop.eup %4081  ;;  %v3906_v60 = vpack.c.bf16 %v4937_v21, %v4932_v8 }
 0x48d   : > { %v4084_v61 = vpop.eup %4083  ;;  %v4945_v42 = vmul.f32 %v4082_v50, %v4774_v48 }
 0x48e   : > { %v4948_v5 = vmul.f32 %v4084_v61, %v4776_v49  ;;  %v4086_v19 = vpop.eup %4085 }
 0x48f   : > { %v4956_v22 = vmul.f32 %v4086_v19, %v4718_v3  ;;  %v4088_v3 = vpop.eup %4087 }
 0x490   : > { %v3874_v43 = vpack.c.bf16 %v4948_v5, %v4945_v42  ;;  %v4970_v27 = vmul.f32 %v4088_v3, %v4747_v11 }
 0x491   : > { %v1738_v24 = vpop.xlane.xlu0 %1737  ;;  %v3886_v56 = vpack.c.bf16 %v4956_v22, %v4915_v55 }
 0x492   : > { %3876 = vmatpush3.bf16.xpose.msk.msra.mxu0 %vm4879_vm3, %v3874_v43  ;;  %v1735_v2 = vpop.xlane.xlu1 %1734 }
 0x493   : > { %4089 = vrcp.f32 %v1735_v2  ;;  %3885 = vmatprep.subr.bf16.mxu0 %v4295_v30  ;;  %v4986_v2 = vsub.s32 %v2501_v7, %v4975_v63 }
 0x495   : > { %v1678_v48 = vpop.xlane.xlu0 %1677 }
 0x496   : > { %4091 = vrcp.f32 %v1678_v48  ;;  %v1675_v49 = vpop.xlane.xlu1 %1674 }
 0x497   : > { %4093 = vrcp.f32 %v1675_v49 }
 0x499   : > { %3785 = vmatmul.mubr.msk.f32.vlgmr.msra.gmra.mrb[18].mxu0 %vm262_vm0, %v4859_v35  ;;  %v1744_v20 = vpop.xlane.xlu0 %1743 }
 0x49a   : > { %3888 = vmatpush3.bf16.xpose.msk.msra.mxu0 %vm4879_vm3, %v3886_v56  ;;  %4095 = vrcp.f32 %v1744_v20  ;;  %v1741_v23 = vpop.xlane.xlu1 %1740  ;;  %3806 = vmatprep.mubr.msk.f32.mxu0 %vm4296_vm2, %v4297_v17 }
 0x49b   : > { %4097 = vrcp.f32 %v1741_v23  ;;  %3889 = vmatprep.subr.bf16.mxu0 %v4295_v30 }
 0x49c   : > { %2325 = vrot.lane.b32.xlu1 %v4515_v29, %s4294_s13 }
 0x49d   : > { %v4090_v35 = vpop.eup %4089  ;;  %v1684_v37 = vpop.xlane.xlu0 %1683 }
 0x49e   : > { %v4973_v4 = vmul.f32 %v4090_v35, %v4792_v44  ;;  %4099 = vrcp.f32 %v1684_v37  ;;  %v1681_v25 = vpop.xlane.xlu1 %1680 }
 0x49f   : > { %4101 = vrcp.f32 %v1681_v25 }
 0x4a0   : > { %v4092_v28 = vpop.eup %4091  ;;  %v2715_v50 = vcombine.low %v4970_v27, %v4973_v4  ;;  %v2716_v29 = vcombine.high %v4970_v27, %v4973_v4  ;;  %4103 = vrcp.f32 %v1738_v24 }
 0x4a1   : > { %v4094_v61 = vpop.eup %4093  ;;  %v4982_v11 = vmul.f32 %v4092_v28, %v4800_v58  ;;  %v1696_v44 = vpop.xlane.xlu0 %1695 }
 0x4a2   : > { %v1785_v43 = vmul.f32 %v4094_v61, %v4802_v40  ;;  %4105 = vrcp.f32 %v1696_v44  ;;  %v1693_v19 = vpop.xlane.xlu1 %1692  ;;  %v4996_v40 = vrot.slane %v2683_v52, %v4986_v2 }
 0x4a3   : > { %4107 = vrcp.f32 %v1693_v19 }
 0x4a4   : > { %v4096_v48 = vpop.eup %4095  ;;  %v3878_v49 = vpack.c.bf16 %v4982_v11, %v1785_v43  ;;  %v2667_v56 = vcombine.low %v4875_v33, %v1785_v43  ;;  %v2668_v20 = vcombine.high %v4875_v33, %v1785_v43  ;;  %4109 = vrcp.f32 %v4911_v9 }
 0x4a5   : > { %v4098_v24 = vpop.eup %4097  ;;  %v1702_v58 = vpop.xlane.xlu0 %1701  ;;  %v5010_v9 = vrot.slane %v2684_v62, %v4986_v2  ;;  %v5013_v52 = vmul.f32 %v4096_v48, %v4810_v13 }
 0x4a6   : > { %4111 = vrcp.f32 %v1702_v58  ;;  %v1699_v23 = vpop.xlane.xlu1 %1698  ;;  %3880 = vmatpush3.bf16.xpose.msk.msra.mxu1 %vm4879_vm3, %v3878_v49  ;;  %v5001_v3 = vrot.slane %v2667_v56, %v4986_v2  ;;  %v5004_v33 = vrot.slane %v2668_v20, %v4986_v2  ;;  %v5017_v36 = vmul.f32 %v4098_v24, %v4812_v6 }
 0x4a7   : > { %4113 = vrcp.f32 %v1699_v23  ;;  %3881 = vmatprep.subr.bf16.mxu1 %v4295_v30  ;;  %v3124_v56 = vcombine.high %v4937_v21, %v5013_v52  ;;  %v4299_v24 = vmov 1934713408  }
 0x4a8   : > { %v4100_v26 = vpop.eup %4099  ;;  %v2732_v57 = vcombine.high %v5001_v3, %v4996_v40  ;;  %v2731_v35 = vcombine.low %v5001_v3, %v4996_v40  ;;  %v2747_v55 = vcombine.low %v5004_v33, %v5010_v9  ;;  %v2748_v7 = vcombine.high %v5004_v33, %v5010_v9 }
 0x4a9   : > { %v4102_v10 = vpop.eup %4101  ;;  %v1788_v13 = vmul.f32 %v4100_v26, %v4820_v46  ;;  %v1708_v62 = vpop.xlane.xlu0 %1707  ;;  %v3123_v46 = vcombine.low %v4937_v21, %v5013_v52  ;;  %v2564_v58 = vunpack.c.l.s4 %v4299_v24 }
 0x4aa   : > { %v5027_v37 = vmul.f32 %v4102_v10, %v4822_v45  ;;  %4115 = vrcp.f32 %v1708_v62  ;;  %v1705_v25 = vpop.xlane.xlu1 %1704  ;;  %v4104_v6 = vpop.eup %4103 }
 0x4ab   : > { %4117 = vrcp.f32 %v1705_v25  ;;  %v3075_v43 = vcombine.low %v4888_v1, %v1788_v13  ;;  %v3076_v49 = vcombine.high %v4888_v1, %v1788_v13  ;;  %v5045_v26 = vmul.f32 %v4104_v6, %v4790_v15 }
 0x4ac   : > { %v4106_v28 = vpop.eup %4105  ;;  %v3882_v61 = vpack.c.bf16 %v1788_v13, %v5027_v37  ;;  %v2939_v62 = vcombine.low %v4892_v12, %v5027_v37  ;;  %v3131_v3 = vrot.slane %v3123_v46, %v4986_v2 }
 0x4ad   : > { %v4108_v45 = vpop.eup %4107  ;;  %v1792_v19 = vmul.f32 %v4106_v28, %v4829_v39  ;;  %v1726_v48 = vpop.xlane.xlu0 %1725  ;;  %v5049_v39 = vrot.slane %v3075_v43, %v4986_v2  ;;  %v5063_v43 = vrot.slane %v3076_v49, %v4986_v2 }
 0x4ae   : > { %v1791_v20 = vmul.f32 %v4108_v45, %v4831_v47  ;;  %4119 = vrcp.f32 %v1726_v48  ;;  %3884 = vmatpush3.bf16.xpose.msk.msra.mxu1 %vm4879_vm3, %v3882_v61  ;;  %v4110_v23 = vpop.eup %4109 }
 0x4af   : > { %3893 = vmatprep.subr.bf16.mxu1 %v4295_v30  ;;  %v3091_v1 = vcombine.low %v4948_v5, %v1792_v19  ;;  %v3092_v10 = vcombine.high %v4948_v5, %v1792_v19  ;;  %v5097_v15 = vmul.f32 %v4110_v23, %v4745_v18 }
 0x4b0   : > { %v4112_v47 = vpop.eup %4111  ;;  %v3890_v13 = vpack.c.bf16 %v1792_v19, %v1791_v20  ;;  %v2955_v25 = vcombine.low %v4945_v42, %v1791_v20  ;;  %v2803_v19 = vcombine.low %v4872_v32, %v4982_v11 }
 0x4b1   : > { %v4114_v6 = vpop.eup %4113  ;;  %v1794_v28 = vmul.f32 %v4112_v47, %v4837_v51  ;;  %v5060_v61 = vrot.slane %v3091_v1, %v4986_v2  ;;  %v5066_v5 = vrot.slane %v3092_v10, %v4986_v2  ;;  %v5076_v51 = vrot.slane %v2939_v62, %v4986_v2 }
 0x4b2   : > { %v5069_v45 = vmul.f32 %v4114_v6, %v4839_v53  ;;  %3892 = vmatpush3.bf16.xpose.msk.msra.mxu0 %vm4879_vm3, %v3890_v13  ;;  %v5079_v48 = vrot.slane %v2955_v25, %v4986_v2  ;;  %v2940_v1 = vcombine.high %v4892_v12, %v5027_v37  ;;  %v2956_v25 = vcombine.high %v4945_v42, %v1791_v20 }
 0x4b3   : > { %3901 = vmatprep.subr.bf16.mxu0 %v4295_v30  ;;  %v3140_v49 = vcombine.high %v5049_v39, %v5060_v61  ;;  %v3139_v53 = vcombine.low %v5049_v39, %v5060_v61  ;;  %v3155_v24 = vcombine.low %v5063_v43, %v5066_v5  ;;  %v2565_v12 = vunpack.c.0.s8 %v2564_v58 }
 0x4b4   : > { %v4116_v10 = vpop.eup %4115  ;;  %v3894_v47 = vpack.c.bf16 %v1794_v28, %v5069_v45  ;;  %v2819_v37 = vcombine.low %v4918_v14, %v4956_v22  ;;  %v2804_v13 = vcombine.high %v4872_v32, %v4982_v11  ;;  %v2820_v42 = vcombine.high %v4918_v14, %v4956_v22 }
 0x4b5   : > { %v4118_v6 = vpop.eup %4117  ;;  %3796 = vmatmul.mubr.msk.f32.vlgmr.msra.gmra.mrb[24].mxu1 %vm262_vm0, %v4857_v0  ;;  %v5113_v18 = vrot.slane %v2940_v1, %v4986_v2  ;;  %v5116_v0 = vrot.slane %v2956_v25, %v4986_v2  ;;  %v5123_v14 = vmul.f32 %v4116_v10, %v4845_v59  ;;  %v2811_v58 = vrot.slane %v2803_v19, %v4986_v2 }
 0x4b6   : > { %3896 = vmatpush3.bf16.xpose.msk.msra.mxu1 %vm4879_vm3, %v3894_v47  ;;  %3817 = vmatprep.mubr.msk.f32.mxu1 %vm4296_vm2, %v4297_v17  ;;  %v5126_v22 = vmul.f32 %v4118_v6, %v4847_v16  ;;  %v2851_v23 = vcombine.low %v5097_v15, %v5045_v26  ;;  %v2852_v47 = vcombine.high %v5097_v15, %v5045_v26 }
 0x4b7   : > { %3897 = vmatprep.subr.bf16.mxu1 %v4295_v30  ;;  %v2827_v16 = vrot.slane %v2819_v37, %v4986_v2  ;;  %v2818_v10 = vrot.slane %v2804_v13, %v4986_v2  ;;  %v5143_v19 = vsub.s32 %v2565_v12, %v4975_v63  ;;  %v2834_v20 = vrot.slane %v2820_v42, %v4986_v2 }
 0x4b8   : > { %v4120_v11 = vpop.eup %4119  ;;  %v2859_v62 = vrot.slane %v2851_v23, %v4986_v2  ;;  %v2866_v63 = vrot.slane %v2852_v47, %v4986_v2  ;;  %v5606_v41 = vcombine.high %v5076_v51, %v5079_v48 }
 0x4b9   : > { %v5132_v1 = vmul.f32 %v4120_v11, %v4853_v34  ;;  %v3898_v11 = vpack.c.bf16 %v5123_v14, %v5126_v22  ;;  %v2868_v25 = vcombine.high %v2811_v58, %v2827_v16  ;;  %v2867_v37 = vcombine.low %v2811_v58, %v2827_v16 }
 0x4ba   : > { %v2883_v12 = vcombine.low %v2818_v10, %v2834_v20  ;;  %v3154_v9 = vrot.slane %v3140_v49, %v5143_v19 }
 0x4bb   : > { %v2835_v6 = vcombine.low %v1794_v28, %v5132_v1  ;;  %v2836_v34 = vcombine.high %v1794_v28, %v5132_v1  ;;  %v2882_v23 = vrot.slane %v2868_v25, %v5143_v19 }
 0x4bc   : > { %v5169_v16 = vrot.slane %v2883_v12, %v5143_v19 }
 0x4bd   : > { %v2843_v59 = vrot.slane %v2835_v6, %v4986_v2  ;;  %v2850_v13 = vrot.slane %v2836_v34, %v4986_v2  ;;  %v5160_v6 = vrot.slane %v2867_v37, %v5143_v19 }
 0x4be   : > { %3900 = vmatpush3.bf16.xpose.msk.msra.mxu1 %vm4879_vm3, %v3898_v11 }
 0x4bf   : > { %v2900_v28 = vcombine.high %v2843_v59, %v2859_v62  ;;  %v2899_v44 = vcombine.low %v2843_v59, %v2859_v62  ;;  %v2915_v32 = vcombine.low %v2850_v13, %v2866_v63  ;;  %3909 = vmatprep.subr.bf16.mxu1 %v4295_v30  ;;  %v2916_v34 = vcombine.high %v2850_v13, %v2866_v63 }
 0x4c1   : > { %v2914_v42 = vrot.slane %v2900_v28, %v5143_v19  ;;  %v5163_v58 = vrot.slane %v2899_v44, %v5143_v19  ;;  %v5166_v47 = vrot.slane %v2915_v32, %v5143_v19  ;;  %v2884_v44 = vcombine.high %v2818_v10, %v2834_v20 }
 0x4c2   : > { %v2930_v12 = vrot.slane %v2916_v34, %v5143_v19 }
 0x4c3   : > { %v2933_v62 = vcombine.low %v2882_v23, %v2914_v42  ;;  %v2932_v59 = vcombine.high %v5160_v6, %v5163_v58  ;;  %v2931_v25 = vcombine.low %v5160_v6, %v5163_v58  ;;  %v2935_v11 = vcombine.low %v5169_v16, %v5166_v47 }
 0x4c4   : > { %v2936_v32 = vcombine.high %v5169_v16, %v5166_v47  ;;  %v2934_v37 = vcombine.high %v2882_v23, %v2914_v42  ;;  %v2898_v13 = vrot.slane %v2884_v44, %v5143_v19  ;;  %v3902_v42 = vpack.c.bf16 %v5097_v15, %v4970_v27 }
 0x4c5   : > { %3240 = vrot.lane.b32.xlu0 %v2933_v62, %s4294_s13  ;;  %3236 = vrot.lane.b32.xlu1 %v2932_v59, %s4300_s9  ;;  %v2723_v44 = vrot.slane %v2715_v50, %v4986_v2  ;;  %v3918_v15 = vpack.c.bf16 %v5045_v26, %v4973_v4  ;;  %v5223_v27 = vrot.slane %v2731_v35, %v5143_v19 }
 0x4c6   : > { %v2938_v63 = vcombine.high %v2898_v13, %v2930_v12  ;;  %v2937_v28 = vcombine.low %v2898_v13, %v2930_v12  ;;  %v5229_v4 = vrot.slane %v2747_v55, %v5143_v19 }
 0x4c9   : > { %3248 = vrot.lane.b32.xlu0 %v2936_v32, %s4300_s9  ;;  %3244 = vrot.lane.b32.xlu1 %v2934_v37, %s4293_s12  ;;  %v2730_v32 = vrot.slane %v2716_v29, %v4986_v2  ;;  %v2762_v29 = vrot.slane %v2748_v7, %v5143_v19 }
 0x4cd   : > { %3256 = vrot.lane.b32.xlu0 %v2938_v63, %s4293_s12  ;;  %3252 = vrot.lane.b32.xlu1 %v2937_v28, %s4294_s13 }
 0x4df   : > { %v1723_v62 = vpop.xlane.xlu1 %1722 }
 0x4e0   : > { %4121 = vrcp.f32 %v1723_v62 }
 0x4e2   : > { %v1732_v20 = vpop.xlane.xlu0 %1731 }
 0x4e3   : > { %4123 = vrcp.f32 %v1732_v20  ;;  %v2154_v10 = vpop.permute.xlu1 %2153 }
 0x4e4   : > { %3818 = vmatmul.mubr.msk.f32.vlgmr.msra.gmra.mrb[26].mxu1 %vm262_vm0, %v2154_v10 }
 0x4e5   : > { %3839 = vmatprep.mubr.msk.f32.mxu1 %vm4296_vm2, %v4297_v17 }
 0x4e6   : > { %v2068_v23 = vpop.permute.xlu0 %2067 }
 0x4e7   : > { %3807 = vmatmul.mubr.msk.f32.vlgmr.msra.gmra.mrb[20].mxu0 %vm262_vm0, %v2068_v23 }
 0x4e8   : > { %3904 = vmatpush3.bf16.xpose.msk.msra.mxu0 %vm4879_vm3, %v3902_v42  ;;  %3828 = vmatprep.mubr.msk.f32.mxu0 %vm4296_vm2, %v4297_v17  ;;  %v2240_v42 = vpop.permute.xlu1 %2239 }
 0x4e9   : > { %3905 = vmatprep.subr.bf16.mxu0 %v4295_v30 }
 0x4ea   : > { %v4122_v59 = vpop.eup %4121 }
 0x4eb   : > { %v1801_v34 = vmul.f32 %v4122_v59, %v4863_v31  ;;  %v2746_v31 = vrot.slane %v2732_v57, %v5143_v19  ;;  %v3138_v57 = vrot.slane %v3124_v56, %v4986_v2  ;;  %v5267_v56 = vrot.slane %v3139_v53, %v5143_v19 }
 0x4ed   : > { %v4124_v37 = vpop.eup %4123  ;;  %v3910_v12 = vpack.c.bf16 %v5132_v1, %v1801_v34  ;;  %v2699_v13 = vcombine.low %v5069_v45, %v1801_v34  ;;  %v2700_v50 = vcombine.high %v5069_v45, %v1801_v34  ;;  %v5274_v45 = vrot.slane %v3155_v24, %v5143_v19 }
 0x4ee   : > { %v5217_v63 = vmul.f32 %v4124_v37, %v4867_v54 }
 0x4ef   : > { %3912 = vmatpush3.bf16.xpose.msk.msra.mxu1 %vm4879_vm3, %v3910_v12  ;;  %v2707_v54 = vrot.slane %v2699_v13, %v4986_v2  ;;  %v2714_v40 = vrot.slane %v2700_v50, %v4986_v2 }
 0x4f0   : > { %3908 = vmatpush3.bf16.xpose.msk.msra.mxu0 %vm4879_vm3, %v3906_v60  ;;  %v3107_v33 = vcombine.low %v5123_v14, %v5217_v63  ;;  %v3108_v35 = vcombine.high %v5123_v14, %v5217_v63  ;;  %3913 = vmatprep.subr.bf16.mxu1 %v4295_v30 }
 0x4f1   : > { %3917 = vmatprep.subr.bf16.mxu0 %v4295_v30  ;;  %v2764_v55 = vcombine.high %v2707_v54, %v2723_v44  ;;  %v2763_v21 = vcombine.low %v2707_v54, %v2723_v44  ;;  %v2779_v7 = vcombine.low %v2714_v40, %v2730_v32  ;;  %v2780_v46 = vcombine.high %v2714_v40, %v2730_v32 }
 0x4f2   : > { %v3115_v60 = vrot.slane %v3107_v33, %v4986_v2  ;;  %v3122_v26 = vrot.slane %v3108_v35, %v4986_v2 }
 0x4f3   : > { %v2778_v49 = vrot.slane %v2764_v55, %v5143_v19  ;;  %v5278_v14 = vrot.slane %v2763_v21, %v5143_v19  ;;  %v5281_v1 = vrot.slane %v2779_v7, %v5143_v19  ;;  %v2794_v39 = vrot.slane %v2780_v46, %v5143_v19 }
 0x4f4   : > { %v3172_v61 = vcombine.high %v3115_v60, %v3131_v3  ;;  %v3171_v53 = vcombine.low %v3115_v60, %v3131_v3  ;;  %v3187_v28 = vcombine.low %v3122_v26, %v3138_v57  ;;  %v3188_v62 = vcombine.high %v3122_v26, %v3138_v57 }
 0x4f5   : > { %v2797_v20 = vcombine.low %v2746_v31, %v2778_v49  ;;  %v2796_v10 = vcombine.high %v5223_v27, %v5278_v14  ;;  %v2800_v24 = vcombine.high %v5229_v4, %v5281_v1  ;;  %v2798_v23 = vcombine.high %v2746_v31, %v2778_v49 }
 0x4f6   : > { %v2802_v59 = vcombine.high %v2762_v29, %v2794_v39  ;;  %v2801_v34 = vcombine.low %v2762_v29, %v2794_v39  ;;  %v3186_v44 = vrot.slane %v3172_v61, %v5143_v19  ;;  %v5290_v32 = vrot.slane %v3171_v53, %v5143_v19 }
 0x4f7   : > { %3829 = vmatmul.mubr.msk.f32.vlgmr.msra.gmra.mrb[22].mxu0 %vm262_vm0, %v2240_v42  ;;  %3216 = vrot.lane.b32.xlu0 %v2797_v20, %s4294_s13  ;;  %v5295_v37 = vrot.slane %v3187_v28, %v5143_v19  ;;  %v2795_v12 = vcombine.low %v5223_v27, %v5278_v14  ;;  %v2799_v13 = vcombine.low %v5229_v4, %v5281_v1 }
 0x4f8   : > { %3212 = vrot.lane.b32.xlu1 %v2796_v10, %s4300_s9  ;;  %3920 = vmatpush3.bf16.xpose.msk.msra.mxu0 %vm4879_vm3, %v3918_v15  ;;  %v3205_v31 = vcombine.low %v3154_v9, %v3186_v44  ;;  %v3204_v50 = vcombine.high %v5267_v56, %v5290_v32  ;;  %v3206_v29 = vcombine.high %v3154_v9, %v3186_v44 }
 0x4f9   : > { %3921 = vmatprep.subr.bf16.mxu0 %v4295_v30  ;;  %3850 = vmatprep.mubr.msk.f32.mxu0 %vm4296_vm2, %v4297_v17  ;;  %v3208_v54 = vcombine.high %v5274_v45, %v5295_v37  ;;  %v3203_v40 = vcombine.low %v5267_v56, %v5290_v32  ;;  %v3207_v3 = vcombine.low %v5274_v45, %v5295_v37 }
 0x4fa   : > { %v5602_v15 = vcombine.high %v5063_v43, %v5066_v5  ;;  %v5322_v30 = vrot.slane %v3188_v62, %v5143_v19  ;;  %v5603_v43 = vpack.c.bf16 %v5013_v52, %v5017_v36  ;;  %v2412_v5 = vpop.permute.xlu0 %2411  ;;  %v5604_v60 = vcombine.low %v4932_v8, %v5017_v36 }
 0x4fb   : > { %3224 = vrot.lane.b32.xlu0 %v2800_v24, %s4300_s9  ;;  %v3018_v28 = vrot.slane %v5606_v41, %v5143_v19  ;;  %v5607_v62 = vcombine.low %v5076_v51, %v5079_v48  ;;  %v5609_v51 = vcombine.high %v5113_v18, %v5116_v0 }
 0x4fc   : > { %v5319_v57 = vrot.slane %v5602_v15, %v5143_v19  ;;  %3220 = vrot.lane.b32.xlu1 %v2798_v23, %s4293_s12  ;;  %v2995_v26 = vrot.slane %v5604_v60, %v4986_v2 }
 0x4fd   : > { %v5366_v20 = vrot.slane %v5607_v62, %v5143_v19  ;;  %v3034_v48 = vrot.slane %v5609_v51, %v5143_v19 }
 0x4fe   : > { %v3210_v17 = vcombine.high %v5319_v57, %v5322_v30  ;;  %v3209_v33 = vcombine.low %v5319_v57, %v5322_v30 }
 0x4ff   : > { %3232 = vrot.lane.b32.xlu0 %v2802_v59, %s4293_s12 }
 0x500   : > { %3228 = vrot.lane.b32.xlu1 %v2801_v34, %s4294_s13  ;;  %3924 = vmatpush3.bf16.xpose.msk.msra.mxu0 %vm4879_vm3, %v5603_v43 }
 0x503   : > { %3288 = vrot.lane.b32.xlu0 %v3205_v31, %s4294_s13 }
 0x504   : > { %3284 = vrot.lane.b32.xlu1 %v3204_v50, %s4300_s9 }
 0x507   : > { %3851 = vmatmul.mubr.msk.f32.vlgmr.msra.gmra.mrb[24].mxu0 %vm262_vm0, %v2412_v5  ;;  %3296 = vrot.lane.b32.xlu0 %v3208_v54, %s4300_s9 }
 0x508   : > { %3292 = vrot.lane.b32.xlu1 %v3206_v29, %s4293_s12 }
 0x518   : > { %v1729_v9 = vpop.xlane.xlu1 %1728 }
 0x519   : > { %4125 = vrcp.f32 %v1729_v9 }
 0x51c   : > { %v2326_v59 = vpop.permute.xlu1 %2325 }
 0x523   : > { %v4126_v35 = vpop.eup %4125 }
 0x524   : > { %v1803_v55 = vmul.f32 %v4126_v35, %v4923_v38  ;;  %v5605_v38 = vcombine.high %v4932_v8, %v5017_v36  ;;  %v5608_v8 = vcombine.low %v5113_v18, %v5116_v0 }
 0x526   : > { %v3914_v52 = vpack.c.bf16 %v5217_v63, %v1803_v55  ;;  %v2971_v21 = vcombine.low %v5126_v22, %v1803_v55  ;;  %v2972_v7 = vcombine.high %v5126_v22, %v1803_v55  ;;  %v3002_v63 = vrot.slane %v5605_v38, %v4986_v2 }
 0x527   : > { %v5372_v36 = vrot.slane %v5608_v8, %v5143_v19 }
 0x528   : > { %3916 = vmatpush3.bf16.xpose.msk.msra.mxu1 %vm4879_vm3, %v3914_v52  ;;  %v2979_v46 = vrot.slane %v2971_v21, %v4986_v2  ;;  %v2986_v49 = vrot.slane %v2972_v7, %v4986_v2 }
 0x52a   : > { %v3036_v39 = vcombine.high %v2979_v46, %v2995_v26  ;;  %v3035_v61 = vcombine.low %v2979_v46, %v2995_v26  ;;  %v3051_v22 = vcombine.low %v2986_v49, %v3002_v63  ;;  %v3052_v53 = vcombine.high %v2986_v49, %v3002_v63 }
 0x52c   : > { %v3050_v10 = vrot.slane %v3036_v39, %v5143_v19  ;;  %v5376_v24 = vrot.slane %v3035_v61, %v5143_v19  ;;  %v5379_v23 = vrot.slane %v3051_v22, %v5143_v19  ;;  %v3066_v42 = vrot.slane %v3052_v53, %v5143_v19 }
 0x52e   : > { %v3069_v34 = vcombine.low %v3018_v28, %v3050_v10  ;;  %v3068_v44 = vcombine.high %v5366_v20, %v5376_v24  ;;  %v3072_v31 = vcombine.high %v5372_v36, %v5379_v23  ;;  %v3070_v50 = vcombine.high %v3018_v28, %v3050_v10 }
 0x52f   : > { %3840 = vmatmul.mubr.msk.f32.vlgmr.msra.gmra.mrb[28].mxu1 %vm262_vm0, %v2326_v59  ;;  %v3074_v29 = vcombine.high %v3034_v48, %v3066_v42  ;;  %v3073_v54 = vcombine.low %v3034_v48, %v3066_v42  ;;  %v3067_v15 = vcombine.low %v5366_v20, %v5376_v24  ;;  %v3071_v18 = vcombine.low %v5372_v36, %v5379_v23 }
 0x530   : > { %3264 = vrot.lane.b32.xlu0 %v3069_v34, %s4294_s13  ;;  %3260 = vrot.lane.b32.xlu1 %v3068_v44, %s4300_s9 }
 0x534   : > { %3272 = vrot.lane.b32.xlu0 %v3072_v31, %s4300_s9  ;;  %3268 = vrot.lane.b32.xlu1 %v3070_v50, %s4293_s12 }
 0x537   : > { %v3237_v0 = vpop.permute.xlu1 %3236  ;;  %v3241_v43 = vpop.permute.xlu0 %3240 }
 0x538   : > { %v3313_v5 = vsel %vm262_vm0, %v2931_v25, %v3237_v0  ;;  %3280 = vrot.lane.b32.xlu0 %v3074_v29, %s4293_s12  ;;  %3276 = vrot.lane.b32.xlu1 %v3073_v54, %s4294_s13 }
 0x539   : > { %v3314_v9 = vsel %vm2658_vm4, %v3313_v5, %v3241_v43 }
 0x53b   : > { %v3245_v35 = vpop.permute.xlu1 %3244  ;;  %v3249_v55 = vpop.permute.xlu0 %3248 }
 0x53c   : > { %v3315_v52 = vsel %vm2660_vm5, %v3314_v9, %v3245_v35  ;;  %v1891_v21 = vpop.f32.mrb[22].mxu1  ;;  %v3316_v58 = vsel %vm262_vm0, %v2935_v11, %v3249_v55 }
 0x53d   : > { %3333 = vst [vmem:[%s5409_s28 + $0x10] sm:$0xff] %v3315_v52  ;;  %v3775_v6 = vpop.f32.mrb[23].mxu1 }
 0x53f   : > { %v3253_v25 = vpop.permute.xlu1 %3252  ;;  %v3257_v7 = vpop.permute.xlu0 %3256 }
 0x540   : > { %v3317_v46 = vsel %vm2658_vm4, %v3316_v58, %v3253_v25 }
 0x541   : > { %v3318_v60 = vsel %vm2660_vm5, %v3317_v46, %v3257_v7 }
 0x542   : > { %3334 = vst [vmem:[%s5409_s28 + $0x18] sm:$0xff] %v3318_v60 }
 0x569   : > { %v3217_v26 = vpop.permute.xlu0 %3216 }
 0x56a   : > { %v3213_v49 = vpop.permute.xlu1 %3212 }
 0x56b   : > { %v3307_v38 = vsel %vm262_vm0, %v2795_v12, %v3213_v49 }
 0x56c   : > { %v1977_v63 = vpop.f32.mrb[18].mxu0  ;;  %v3308_v11 = vsel %vm2658_vm4, %v3307_v38, %v3217_v26 }
 0x56d   : > { %v3786_v47 = vpop.f32.mrb[19].mxu0  ;;  %v3225_v16 = vpop.permute.xlu0 %3224 }
 0x56e   : > { %v3221_v39 = vpop.permute.xlu1 %3220  ;;  %v3310_v53 = vsel %vm262_vm0, %v2799_v13, %v3225_v16 }
 0x56f   : > { %v3309_v61 = vsel %vm2660_vm5, %v3308_v11, %v3221_v39 }
 0x570   : > { %3331 = vst [vmem:[%s5409_s28] sm:$0xff] %v3309_v61 }
 0x571   : > { %v3233_v22 = vpop.permute.xlu0 %3232 }
 0x572   : > { %v3229_v41 = vpop.permute.xlu1 %3228 }
 0x573   : > { %v3311_v27 = vsel %vm2658_vm4, %v3310_v53, %v3229_v41 }
 0x574   : > { %v3312_v14 = vsel %vm2660_vm5, %v3311_v27, %v3233_v22 }
 0x575   : > { %3332 = vst [vmem:[%s5409_s28 + $0x8] sm:$0xff] %v3312_v14  ;;  %v3289_v12 = vpop.permute.xlu0 %3288 }
 0x576   : > { %v3285_v28 = vpop.permute.xlu1 %3284 }
 0x577   : > { %v3325_v62 = vsel %vm262_vm0, %v3203_v40, %v3285_v28 }
 0x578   : > { %v3326_v8 = vsel %vm2658_vm4, %v3325_v62, %v3289_v12 }
 0x579   : > { %v3297_v20 = vpop.permute.xlu0 %3296 }
 0x57a   : > { %v3293_v4 = vpop.permute.xlu1 %3292  ;;  %v5442_v1 = vsel %vm262_vm0, %v3207_v3, %v3297_v20 }
 0x57b   : > { %v3327_v13 = vsel %vm2660_vm5, %v3326_v8, %v3293_v4 }
 0x57c   : > { %3337 = vst [vmem:[%s5409_s28 + $0x30] sm:$0xff] %v3327_v13 }
 0x588   : > { %v2063_v10 = vpop.f32.mrb[24].mxu1 }
 0x589   : > { %v2497_v24 = vcombine.low %v1891_v21, %v2063_v10  ;;  %v2498_v56 = vcombine.high %v1891_v21, %v2063_v10  ;;  %v3797_v32 = vpop.f32.mrb[25].mxu1 }
 0x58b   : > { %v2505_v9 = vrot.slane %v2497_v24, %v4986_v2  ;;  %v2512_v35 = vrot.slane %v2498_v56, %v4986_v2 }
 0x5a2   : > { %v3261_v40 = vpop.permute.xlu1 %3260  ;;  %v3265_v42 = vpop.permute.xlu0 %3264 }
 0x5a3   : > { %v3319_v51 = vsel %vm262_vm0, %v3067_v15, %v3261_v40 }
 0x5a4   : > { %v3320_v48 = vsel %vm2658_vm4, %v3319_v51, %v3265_v42 }
 0x5a6   : > { %v3269_v59 = vpop.permute.xlu1 %3268  ;;  %v3273_v34 = vpop.permute.xlu0 %3272 }
 0x5a7   : > { %v3321_v45 = vsel %vm2660_vm5, %v3320_v48, %v3269_v59  ;;  %v3322_v37 = vsel %vm262_vm0, %v3071_v18, %v3273_v34 }
 0x5a8   : > { %3335 = vst [vmem:[%s5409_s28 + $0x20] sm:$0xff] %v3321_v45 }
 0x5aa   : > { %v3277_v3 = vpop.permute.xlu1 %3276  ;;  %v3281_v44 = vpop.permute.xlu0 %3280 }
 0x5ab   : > { %v3323_v31 = vsel %vm2658_vm4, %v3322_v37, %v3277_v3 }
 0x5ac   : > { %v3324_v50 = vsel %vm2660_vm5, %v3323_v31, %v3281_v44 }
 0x5ad   : > { %3336 = vst [vmem:[%s5409_s28 + $0x28] sm:$0xff] %v3324_v50 }
 0x5b7   : > { %v2235_v29 = vpop.f32.mrb[26].mxu1 }
 0x5b8   : > { %v3819_v54 = vpop.f32.mrb[27].mxu1 }
 0x5ba   : > { %v2149_v15 = vpop.f32.mrb[20].mxu0 }
 0x5bb   : > { %v2513_v0 = vcombine.low %v1977_v63, %v2149_v15  ;;  %v2514_v43 = vcombine.high %v1977_v63, %v2149_v15  ;;  %v3808_v5 = vpop.f32.mrb[21].mxu0 }
 0x5bd   : > { %v2521_v36 = vrot.slane %v2513_v0, %v4986_v2  ;;  %v2528_v23 = vrot.slane %v2514_v43, %v4986_v2 }
 0x5bf   : > { %v2561_v18 = vcombine.low %v2505_v9, %v2521_v36  ;;  %v2562_v55 = vcombine.high %v2505_v9, %v2521_v36  ;;  %v2577_v52 = vcombine.low %v2512_v35, %v2528_v23  ;;  %v2578_v21 = vcombine.high %v2512_v35, %v2528_v23 }
 0x5c1   : > { %v2569_v27 = vrot.slane %v2561_v18, %v5143_v19  ;;  %v2576_v14 = vrot.slane %v2562_v55, %v5143_v19  ;;  %v2585_v12 = vrot.slane %v2577_v52, %v5143_v19 }
 0x5ca   : > { %v2321_v6 = vpop.f32.mrb[22].mxu0 }
 0x5cb   : > { %v3830_v58 = vpop.f32.mrb[23].mxu0 }
 0x5da   : > { %v2493_v25 = vpop.f32.mrb[24].mxu0 }
 0x5db   : > { %v2545_v7 = vcombine.low %v2321_v6, %v2493_v25  ;;  %v2546_v46 = vcombine.high %v2321_v6, %v2493_v25  ;;  %v3852_v60 = vpop.f32.mrb[25].mxu0 }
 0x5dd   : > { %v2553_v47 = vrot.slane %v2545_v7, %v4986_v2  ;;  %v2560_v16 = vrot.slane %v2546_v46, %v4986_v2 }
 0x602   : > { %v2407_v26 = vpop.f32.mrb[28].mxu1 }
 0x603   : > { %v2529_v49 = vcombine.low %v2235_v29, %v2407_v26  ;;  %v2530_v38 = vcombine.high %v2235_v29, %v2407_v26  ;;  %v3841_v63 = vpop.f32.mrb[29].mxu1 }
 0x605   : > { %v2537_v11 = vrot.slane %v2529_v49, %v4986_v2  ;;  %v2544_v39 = vrot.slane %v2530_v38, %v4986_v2  ;;  %v2592_v2 = vrot.slane %v2578_v21, %v5143_v19 }
 0x607   : > { %v2593_v61 = vcombine.low %v2537_v11, %v2553_v47  ;;  %v2594_v22 = vcombine.high %v2537_v11, %v2553_v47  ;;  %v2609_v53 = vcombine.low %v2544_v39, %v2560_v16  ;;  %v2610_v41 = vcombine.high %v2544_v39, %v2560_v16 }
 0x609   : > { %v2601_v28 = vrot.slane %v2593_v61, %v5143_v19  ;;  %v2608_v62 = vrot.slane %v2594_v22, %v5143_v19  ;;  %v2617_v20 = vrot.slane %v2609_v53, %v5143_v19  ;;  %v2624_v8 = vrot.slane %v2610_v41, %v5143_v19 }
 0x60b   : > { %v2627_v4 = vcombine.low %v2576_v14, %v2608_v62  ;;  %v2626_v13 = vcombine.high %v2569_v27, %v2601_v28  ;;  %v2630_v10 = vcombine.high %v2585_v12, %v2617_v20  ;;  %v2628_v24 = vcombine.high %v2576_v14, %v2608_v62 }
 0x60c   : > { %v2632_v56 = vcombine.high %v2592_v2, %v2624_v8  ;;  %v2631_v32 = vcombine.low %v2592_v2, %v2624_v8  ;;  %v2625_v40 = vcombine.low %v2569_v27, %v2601_v28  ;;  %v2629_v42 = vcombine.low %v2585_v12, %v2617_v20 }
 0x60d   : > { %2638 = vrot.lane.b32.xlu0 %v2627_v4, %s4294_s13  ;;  %2634 = vrot.lane.b32.xlu1 %v2626_v13, %s4300_s9 }
 0x611   : > { %2646 = vrot.lane.b32.xlu0 %v2630_v10, %s4300_s9  ;;  %2642 = vrot.lane.b32.xlu1 %v2628_v24, %s4293_s12 }
 0x615   : > { %2654 = vrot.lane.b32.xlu0 %v2632_v56, %s4293_s12  ;;  %2650 = vrot.lane.b32.xlu1 %v2631_v32, %s4294_s13 }
 0x619   : > { %3304 = vrot.lane.b32.xlu0 %v3210_v17, %s4293_s12  ;;  %3300 = vrot.lane.b32.xlu1 %v3209_v33, %s4294_s13  ;;  %s4189_s12 = sshll.u32 %s4301_s23, 4  ;;  %s4190_s12 = int_to_ptr.vmem [resolvable:$false] %s4189_s12 }
 0x61a   : > { %s4191_s13 = scalar_lea.vmem %s4190_s12, 512  ;;  %p4192_p10 = scmp.lt.s32.totalorder %s5499_s7, %s4190_s12 }
 0x61b   : > { %p4193_p13 = scmp.lt.s32.totalorder %s4191_s13, %s4185_s21 }
 0x61d   : > { %p4194_p3 = por %p4193_p13, %p4192_p10 }
 0x61f   : > { %p4195_p7 = pnand %p4194_p3, %p4188_p8 }
 0x67f   : > { %v2635_v19 = vpop.permute.xlu1 %2634  ;;  %v2639_v51 = vpop.permute.xlu0 %2638 }
 0x680   : > { %v2657_v48 = vsel %vm262_vm0, %v2625_v40, %v2635_v19 }
 0x681   : > { %v2659_v59 = vsel %vm2658_vm4, %v2657_v48, %v2639_v51 }
 0x683   : > { %v2643_v34 = vpop.permute.xlu1 %2642  ;;  %v2647_v45 = vpop.permute.xlu0 %2646 }
 0x684   : > { %v2661_v37 = vsel %vm2660_vm5, %v2659_v59, %v2643_v34  ;;  %v2662_v57 = vsel %vm262_vm0, %v2629_v42, %v2647_v45 }
 0x685   : > { %2665 = vst [vmem:[%s234_s6] sm:$0xff] %v2661_v37 }
 0x687   : > { %v2651_v30 = vpop.permute.xlu1 %2650  ;;  %v2655_v17 = vpop.permute.xlu0 %2654 }
 0x688   : > { %v2663_v33 = vsel %vm2658_vm4, %v2662_v57, %v2651_v30 }
 0x689   : > { %v2664_v3 = vsel %vm2660_vm5, %v2663_v33, %v2655_v17 }
 0x68a   : > { %2666 = vst [vmem:[%s234_s6 + $0x8] sm:$0xff] %v2664_v3 }
 0x68b   : > { %v3301_v44 = vpop.permute.xlu1 %3300  ;;  %v3305_v31 = vpop.permute.xlu0 %3304 }
 0x68c   : > { %4198 = shalt.err (!%p4195_p7)
}
 0x68d   : > { %s4199_s9 = scalar_lea.hbm %s5497_s14, 256  ;;  %s4203_s26 = scalar_lea.hbm %s5584_s3, 512 }
 0x68e   : > { %p4200_p9 = scmp.ne.s32.totalorder %s5497_s14, %s4199_s9  ;;  %p4204_p5 = scmp.lt.u32.totalorder %s5497_s14, %s5584_s3 }
 0x68f   : > { %p4205_p11 = scmp.lt.u32.totalorder %s4203_s26, %s4199_s9  ;;  %p4207_p4 = scmp.lt.u32.totalorder %s4199_s9, %s5497_s14 }
 0x690   : > { %p4201_p1 = pnand %p4200_p9, %p4422_p12 }
 0x691   : > { %p4206_p2 = por %p4205_p11, %p4204_p5 }
 0x692   : > { %p4202_p0 = pneg %p4201_p1 }
 0x693   : > { %p4208_p6 = por %p4207_p4, %p4206_p2 }
 0x695   : > { %p4209_p8 = pnand %p4208_p6, %p4202_p0 }
 0x697   : > { %4212 = shalt.err (!%p4209_p8)
}
 0x698   : > { %3933 = dma.vmem_to_hbm [thread:$0]  (%p4422_p12), %s5499_s7, 256, %s5497_s14, %s3340_s29   ;;  %v3329_v50 = vsel %vm2658_vm4, %v5442_v1, %v3301_v44 }
 0x699   : > { %s5533_s12 = scalar_lea.hbm %s5585_s4, %s3588_s20  ;;  %v3330_v29 = vsel %vm2660_vm5, %v3329_v50, %v3305_v31  ;;  %s3345_s13 = scalar_lea.sflag [#allocation9], %s4473_s11 }
 0x69a   : > { %3338 = vst [vmem:[%s5409_s28 + $0x38] sm:$0xff] %v3330_v29  ;;  %s4213_s7 = scalar_lea.vmem %s5537_s5, 1024  ;;  %s4302_s19 = smov [#allocation8]  }
 0x69b   : > { %p4214_p10 = scmp.ne.s32.totalorder %s5537_s5, %s4213_s7  ;;  %s4217_s14 = sshll.u32 %s4302_s19, 4  ;;  %s4218_s14 = int_to_ptr.vmem [resolvable:$false] %s4217_s14 }
 0x69c   : > { %s4219_s20 = scalar_lea.vmem %s4218_s14, 2048  ;;  %p4220_p7 = scmp.lt.s32.totalorder %s5537_s5, %s4218_s14 }
 0x69d   : > { %p4215_p13 = pnand %p4214_p10, %p4422_p12  ;;  %p4221_p9 = scmp.lt.s32.totalorder %s4219_s20, %s4213_s7 }
 0x69f   : > { %p4216_p3 = pneg %p4215_p13  ;;  %p4222_p1 = por %p4221_p9, %p4220_p7 }
 0x6a1   : > { %p4223_p0 = pnand %p4222_p1, %p4216_p3 }
 0x6a3   : > { %4226 = shalt.err (!%p4223_p0)
}
 0x6a4   : > { %s4227_s11 = scalar_lea.hbm %s5533_s12, 1024  ;;  %s4231_s9 = scalar_lea.hbm %s5585_s4, 2048 }
 0x6a5   : > { %p4228_p5 = scmp.ne.s32.totalorder %s5533_s12, %s4227_s11  ;;  %p4232_p4 = scmp.lt.u32.totalorder %s5533_s12, %s5585_s4 }
 0x6a6   : > { %p4233_p6 = scmp.lt.u32.totalorder %s4231_s9, %s4227_s11  ;;  %p4235_p10 = scmp.lt.u32.totalorder %s4227_s11, %s5533_s12 }
 0x6a7   : > { %p4229_p11 = pnand %p4228_p5, %p4422_p12 }
 0x6a8   : > { %p4234_p8 = por %p4233_p6, %p4232_p4 }
 0x6a9   : > { %p4230_p2 = pneg %p4229_p11 }
 0x6aa   : > { %p4236_p13 = por %p4235_p10, %p4234_p8 }
 0x6ac   : > { %p4237_p3 = pnand %p4236_p13, %p4230_p2 }
 0x6ae   : > { %4240 = shalt.err (!%p4237_p3)
}
 0x6af   : > { %3934 = dma.vmem_to_hbm [thread:$0]  (%p4422_p12), %s5537_s5, 1024, %s5533_s12, %s3345_s13  }
 0x6b0 PF: > { %s3385_s26 = sand.u32 1, %s4275_s15   ;;  %p5610_p7 = scmp.ne.s32.totalorder %s5590_s22, 0 }
 0x6b1   : > { %p5611_p9 = scmp.ge.s32.totalorder %s4287_s18, 2  ;;  %s3386_s8 = scalar_lea.sflag [#allocation4], %s3385_s26 }
 0x6b3   : > { %p3946_p1 = pnand %p5611_p9, %p5610_p7 }
 0x6b5   : > { %4266 = dma.done.wait (!%p3946_p1), %s3386_s8, 256  }
 0x6b6   : > { %4268 = vsyncadd (!%p3946_p1), %s3386_s8, 4294967040  ;;  %s3395_s25 = scalar_lea.sflag [#allocation9], %s3385_s26 }
 0x6b7   : > { %4270 = dma.done.wait (!%p3946_p1), %s3395_s25, 1024  }
 0x6b8   : > { %4272 = vsyncadd (!%p3946_p1), %s3395_s25, 4294966272  ;;  %p22_p12 = scmp.ge.s32.totalorder %s4384_s27, 4   ;;  %s5612_s15 = smov %s4279_s16 }
 0x6b9   : > { %s5613_s16 = smov %s4283_s17  ;;  %s5614_s17 = smov %s4418_s24 }
 0x6ba   : > { %s5615_s18 = smov %s4384_s27  ;;  %24 = sbr.rel (!%p22_p12) target bundleno = 8 (0x8), region = 98 }
 0x6c1   :  { %3400 = vsyncpa [#allocation3], 1 }
 0x6c2   :  { %3402 = vsyncpa [#allocation3 + $0x1], 1 }
 0x6c3   :  { %3403 = vsyncpa [#allocation6], 1 }
 0x6c4   :  { %3404 = vsyncpa [#allocation4], 1 }
 0x6c5   :  { %3406 = vsyncpa [#allocation4 + $0x1], 1 }
 0x6c6   :  { %3407 = vsyncpa [#allocation9], 1 }
 0x6c7   :  { %3409 = vsyncpa [#allocation9 + $0x1], 1 }

</bundles_post_ra>
